<compile_context>
chip_gen: v7x
topology: tpu7x:2x2x1
jax: 0.10.0
libtpu: 0.0.40
codegen_flags: <defaults>
</compile_context>

<pallas_src>
import functools
import math

import jax
import jax.numpy as jnp
from jax.experimental import pallas as pl
from jax.experimental.pallas import tpu as pltpu

EPS = 1e-5
_SQRT_2_OVER_PI = math.sqrt(2.0 / math.pi)
_NEG_INF = -1e30  # finite mask value: avoids exp(-inf - (-inf)) = NaN corner cases


def _vmem_limit_bytes():
    cap = 64 * 1024 * 1024
    try:
        info = pltpu.get_tpu_info()
        cap = int(getattr(info, "vmem_capacity_bytes", cap))
    except Exception:
        pass
    # Leave headroom below physical VMEM so double-buffering never OOMs
    # (v7x: ~48 MiB, v5e/v6e: capped at 96 MiB).
    return int(min(cap * 3 // 4, 96 * 1024 * 1024))


_VMEM_LIMIT = _vmem_limit_bytes()


def _pick_tile(extent, multiple, target, preferred=None):
    """Largest tile <= target that divides `extent` and is a multiple of `multiple`
    (trying `preferred` multiples first, e.g. 256 for the wide-MXU chips).
    Falls back to the full extent (block == full dim is always legal)."""
    if extent <= target:
        return extent
    mults = [preferred, multiple] if preferred and preferred != multiple else [multiple]
    for m in mults:
        t = (target // m) * m
        while t >= m:
            if extent % t == 0:
                return t
            t -= m
    return extent


# ---------------------------------------------------------------------------
# Kernel 1: fused LayerNorm -> bf16 matmul (+ bias) (+ tanh-GELU)
#           LN result cached in VMEM scratch, reused across output-column tiles
# ---------------------------------------------------------------------------
def _ln_matmul_kernel(*refs, activation, has_bias):
    if has_bias:
        x_ref, scale_ref, shift_ref, w_ref, b_ref, o_ref, xn_ref = refs
    else:
        x_ref, scale_ref, shift_ref, w_ref, o_ref, xn_ref = refs
        b_ref = None

    # LayerNorm (f32) + bf16 cast computed ONCE per row tile (j == 0) and cached.
    @pl.when(pl.program_id(1) == 0)
    def _():
        x = x_ref[...].astype(jnp.float32)
        mean = jnp.mean(x, axis=-1, keepdims=True)
        c = x - mean
        var = jnp.mean(c * c, axis=-1, keepdims=True)          # unbiased=False (torch)
        norm = c * jax.lax.rsqrt(var + EPS)
        norm = norm * scale_ref[...].astype(jnp.float32) + shift_ref[...].astype(jnp.float32)
        xn_ref[...] = norm.astype(xn_ref.dtype)

    y = jnp.dot(xn_ref[...], w_ref[...], preferred_element_type=jnp.float32)
    if has_bias:
        y = y + b_ref[...].astype(jnp.float32)
    if activation == "gelu":
        y = 0.5 * y * (1.0 + jnp.tanh(_SQRT_2_OVER_PI * (y + 0.044715 * y * y * y)))
    o_ref[...] = y.astype(o_ref.dtype)


def fused_ln_matmul(x, scale, shift, w, b=None, *, activation=None, out_dtype=None,
                    target_tile_rows=256, target_tile_n=512):
    rows, emb = x.shape
    n = w.shape[1]
    out_dtype = out_dtype or x.dtype
    has_bias = b is not None

    # Keep the output axis lane-dense: pad N up to a multiple of 128 instead of
    # letting the tile fall back to the full extent (avoids (E, V) VMEM blocks).
    n_pad = (-n) % 128
    if n_pad:
        w = jnp.pad(w, ((0, 0), (0, n_pad)))
        if has_bias:
            b = jnp.pad(b, (0, n_pad))
    n_p = n + n_pad

    tr = _pick_tile(rows, 16, target_tile_rows)
    tn = _pick_tile(n_p, 128, target_tile_n, preferred=256)
    grid = (rows // tr, n_p // tn)

    in_specs = [
        pl.BlockSpec((tr, emb), lambda i, j: (i, 0)),
        pl.BlockSpec((1, emb), lambda i, j: (0, 0)),
        pl.BlockSpec((1, emb), lambda i, j: (0, 0)),
        pl.BlockSpec((emb, tn), lambda i, j: (0, j)),
    ]
    operands = [x, scale.reshape(1, emb), shift.reshape(1, emb), w]
    if has_bias:
        in_specs.append(pl.BlockSpec((1, tn), lambda i, j: (0, j)))
        operands.append(b.reshape(1, n_p))

    kernel = functools.partial(_ln_matmul_kernel, activation=activation, has_bias=has_bias)
    out = pl.pallas_call(
        kernel,
        out_shape=jax.ShapeDtypeStruct((rows, n_p), out_dtype),
        grid_spec=pltpu.PrefetchScalarGridSpec(
            num_scalar_prefetch=0,
            grid=grid,
            in_specs=in_specs,
            out_specs=pl.BlockSpec((tr, tn), lambda i, j: (i, j)),
            scratch_shapes=[pltpu.VMEM((tr, emb), jnp.bfloat16)],   # cached LN tile
        ),
        compiler_params=pltpu.CompilerParams(
            # j must stay "arbitrary": the cached-LN scratch is filled at j == 0.
            dimension_semantics=("parallel", "arbitrary"),
            vmem_limit_bytes=_VMEM_LIMIT,
        ),
    )(*operands)
    if n_pad:
        out = out[:, :n]
    return out


# ---------------------------------------------------------------------------
# Kernel 2: K-tiled bf16 matmul + bias + residual add (out-proj, MLP down-proj)
# ---------------------------------------------------------------------------
def _matmul_bias_res_kernel(x_ref, w_ref, b_ref, r_ref, o_ref, acc_ref):
    kk = pl.program_id(2)

    @pl.when(kk == 0)
    def _():
        acc_ref[...] = jnp.zeros(acc_ref.shape, acc_ref.dtype)

    acc_ref[...] += jnp.dot(x_ref[...], w_ref[...], preferred_element_type=jnp.float32)

    @pl.when(kk == pl.num_programs(2) - 1)
    def _():
        y = acc_ref[...] + b_ref[...].astype(jnp.float32) + r_ref[...].astype(jnp.float32)
        o_ref[...] = y.astype(o_ref.dtype)


def matmul_bias_residual(x, w, b, residual, *, target_tile_rows=256,
                         target_tile_n=512, target_tile_k=512):
    rows, kdim = x.shape
    n = w.shape[1]

    n_pad = (-n) % 128
    if n_pad:
        w = jnp.pad(w, ((0, 0), (0, n_pad)))
        b = jnp.pad(b, (0, n_pad))
        residual = jnp.pad(residual, ((0, 0), (0, n_pad)))
    n_p = n + n_pad

    tr = _pick_tile(rows, 16, target_tile_rows)
    tn = _pick_tile(n_p, 128, target_tile_n, preferred=256)
    tk = _pick_tile(kdim, 128, target_tile_k, preferred=256)
    grid = (rows // tr, n_p // tn, kdim // tk)

    out = pl.pallas_call(
        _matmul_bias_res_kernel,
        out_shape=jax.ShapeDtypeStruct((rows, n_p), residual.dtype),
        grid_spec=pltpu.PrefetchScalarGridSpec(
            num_scalar_prefetch=0,
            grid=grid,
            in_specs=[
                pl.BlockSpec((tr, tk), lambda i, j, kk: (i, kk)),
                pl.BlockSpec((tk, tn), lambda i, j, kk: (kk, j)),
                pl.BlockSpec((1, tn), lambda i, j, kk: (0, j)),
                pl.BlockSpec((tr, tn), lambda i, j, kk: (i, j)),
            ],
            out_specs=pl.BlockSpec((tr, tn), lambda i, j, kk: (i, j)),
            scratch_shapes=[pltpu.VMEM((tr, tn), jnp.float32)],
        ),
        compiler_params=pltpu.CompilerParams(
            dimension_semantics=("parallel", "parallel", "arbitrary"),
            vmem_limit_bytes=_VMEM_LIMIT,
        ),
    )(x, w, b.reshape(1, n_p), residual)
    if n_pad:
        out = out[:, :n]
    return out


# ---------------------------------------------------------------------------
# Kernel 3: flash-style causal attention (KV-tiled online softmax,
#           fully-masked KV tiles skipped; one (batch*head) per outer grid step)
# ---------------------------------------------------------------------------
def _flash_attn_kernel(q_ref, k_ref, v_ref, o_ref, m_ref, l_ref, acc_ref, *,
                       scale, tq, tk):
    qi = pl.program_id(1)
    ki = pl.program_id(2)

    @pl.when(ki == 0)
    def _():
        m_ref[...] = jnp.full(m_ref.shape, _NEG_INF, m_ref.dtype)
        l_ref[...] = jnp.zeros(l_ref.shape, l_ref.dtype)
        acc_ref[...] = jnp.zeros(acc_ref.shape, acc_ref.dtype)

    # Causal: skip KV tiles entirely in the future of this Q tile.
    @pl.when(ki * tk <= qi * tq + (tq - 1))
    def _():
        q = q_ref[...] * scale                                       # bf16, O(S*Dh)
        s = jax.lax.dot_general(q, k_ref[...], (((1,), (1,)), ((), ())),
                                preferred_element_type=jnp.float32)  # (tq, tk) f32
        row = qi * tq + jax.lax.broadcasted_iota(jnp.int32, (tq, tk), 0)
        col = ki * tk + jax.lax.broadcasted_iota(jnp.int32, (tq, tk), 1)
        s = jnp.where(col > row, _NEG_INF, s)                        # strict upper masked
        m_prev = m_ref[...]
        m_new = jnp.maximum(m_prev, jnp.max(s, axis=-1, keepdims=True))
        alpha = jnp.exp(m_prev - m_new)
        p = jnp.exp(s - m_new)
        l_ref[...] = alpha * l_ref[...] + jnp.sum(p, axis=-1, keepdims=True)
        acc_ref[...] = alpha * acc_ref[...] + jnp.dot(
            p.astype(v_ref.dtype), v_ref[...], preferred_element_type=jnp.float32)
        m_ref[...] = m_new

    @pl.when(ki == pl.num_programs(2) - 1)
    def _():
        inv_l = pl.reciprocal(l_ref[...], approx=True)
        o_ref[...] = (acc_ref[...] * inv_l).astype(o_ref.dtype)


def flash_causal_attention(q, k, v, *, target_tile=256):
    """q, k, v: [B*H, S, Dh] (bf16) -> context [B*H, S, Dh] (bf16)."""
    BH, S, Dh = q.shape
    scale = 1.0 / math.sqrt(Dh)
    tq = _pick_tile(S, 16, target_tile)
    tk = _pick_tile(S, 16, target_tile)
    grid = (BH, S // tq, S // tk)
    kernel = functools.partial(_flash_attn_kernel, scale=scale, tq=tq, tk=tk)
    q_spec = pl.BlockSpec((None, tq, Dh), lambda b, qi, ki: (b, qi, 0))
    kv_spec = pl.BlockSpec((None, tk, Dh), lambda b, qi, ki: (b, ki, 0))
    return pl.pallas_call(
        kernel,
        out_shape=jax.ShapeDtypeStruct((BH, S, Dh), q.dtype),
        grid_spec=pltpu.PrefetchScalarGridSpec(
            num_scalar_prefetch=0,
            grid=grid,
            in_specs=[q_spec, kv_spec, kv_spec],
            out_specs=pl.BlockSpec((None, tq, Dh), lambda b, qi, ki: (b, qi, 0)),
            scratch_shapes=[pltpu.VMEM((tq, 1), jnp.float32),    # running max
                            pltpu.VMEM((tq, 1), jnp.float32),    # running denom
                            pltpu.VMEM((tq, Dh), jnp.float32)],  # running acc
        ),
        compiler_params=pltpu.CompilerParams(
            dimension_semantics=("parallel", "parallel", "arbitrary"),
            vmem_limit_bytes=_VMEM_LIMIT,
        ),
    )(q, k, v)


# ---------------------------------------------------------------------------
# Model: parameters + forward
# ---------------------------------------------------------------------------
def init_gpt_params(key, cfg):
    E, V, C, L = cfg["emb_dim"], cfg["vocab_size"], cfg["context_length"], cfg["n_layers"]
    kit = iter(jax.random.split(key, 8 + 16 * L))

    def nrm(shape, std=0.02):
        return (std * jax.random.normal(next(kit), shape)).astype(jnp.float32)

    def w16(shape, std=0.02):
        return nrm(shape, std).astype(jnp.bfloat16)     # weights live in bf16

    params = {
        "tok_emb": nrm((V, E), 1.0),
        "pos_emb": nrm((C, E), 1.0),
        "final_norm": {"scale": 1.0 + nrm((E,), 0.1), "shift": nrm((E,), 0.05)},
        "out_head": w16((E, V)),            # Linear(E, V, bias=False), stored [in, out]
        "blocks": [],
    }
    for _ in range(L):
        params["blocks"].append({
            "norm1": {"scale": 1.0 + nrm((E,), 0.1), "shift": nrm((E,), 0.05)},
            "norm2": {"scale": 1.0 + nrm((E,), 0.1), "shift": nrm((E,), 0.05)},
            "w_qkv": w16((E, 3 * E)),       # [Wq | Wk | Wv], qkv_bias=False
            "w_out": w16((E, E)),
            "b_out": nrm((E,), 0.02),
            "w_up": w16((E, 4 * E)),
            "b_up": nrm((4 * E,), 0.02),
            "w_down": w16((4 * E, E)),
            "b_down": nrm((E,), 0.02),
        })
    return params


def gpt_forward(params, in_idx, cfg):
    B, T = in_idx.shape
    E = cfg["emb_dim"]
    H = cfg["n_heads"]
    Dh = E // H

    # TODO(synk): embedding lookup is a data-dependent gather with no rectangular
    # BlockSpec; kept in plain JAX.  Dropout layers are identity (inference / p=0).
    x = params["tok_emb"][in_idx] + params["pos_emb"][:T][None, :, :]
    x2 = x.reshape(B * T, E)                                  # f32 residual stream

    for blk in params["blocks"]:
        # --- attention sub-block: LN1 fused into the bf16 QKV projection ---
        qkv = fused_ln_matmul(x2, blk["norm1"]["scale"], blk["norm1"]["shift"],
                              blk["w_qkv"], None, out_dtype=jnp.bfloat16)
        q, k, v = jnp.split(qkv, 3, axis=-1)

        # TODO(synk): the head split/merge transposes remain XLA copies; folding
        # them into the kernels via per-head column BlockSpecs needs Dh>=128 blocks.
        def to_heads(t):
            return t.reshape(B, T, H, Dh).transpose(0, 2, 1, 3).reshape(B * H, T, Dh)

        ctx = flash_causal_attention(to_heads(q), to_heads(k), to_heads(v))
        ctx = ctx.reshape(B, H, T, Dh).transpose(0, 2, 1, 3).reshape(B * T, E)
        # out-projection: bias + residual add fused, K-tiled f32 accumulator
        x2 = matmul_bias_residual(ctx, blk["w_out"], blk["b_out"], x2)

        # --- MLP sub-block: LN2 fused into the bf16 up-projection + GELU ---
        h = fused_ln_matmul(x2, blk["norm2"]["scale"], blk["norm2"]["shift"],
                            blk["w_up"], blk["b_up"], activation="gelu",
                            out_dtype=jnp.bfloat16)
        # down-projection (K = 4E): bias + residual fused, K-tiled accumulator
        x2 = matmul_bias_residual(h, blk["w_down"], blk["b_down"], x2)

    # final LayerNorm fused into the LM head (no bias); larger row tiles so the
    # big vocab weight is re-streamed fewer times.
    logits = fused_ln_matmul(x2, params["final_norm"]["scale"],
                             params["final_norm"]["shift"],
                             params["out_head"], None,
                             out_dtype=jnp.float32, target_tile_rows=512)
    return logits.reshape(B, T, cfg["vocab_size"])


# ---------------------------------------------------------------------------
# Pure-JAX reference: mirrors the PyTorch module semantics and the kernels'
# numerics (bf16 MXU operands, f32 accumulation / LN / softmax / GELU).
# ---------------------------------------------------------------------------
def gpt_forward_ref(params, in_idx, cfg):
    B, T = in_idx.shape
    E = cfg["emb_dim"]
    H = cfg["n_heads"]
    Dh = E // H
    bf16 = jnp.bfloat16

    def ln(x, scale, shift):
        mean = jnp.mean(x, axis=-1, keepdims=True)
        var = jnp.mean((x - mean) ** 2, axis=-1, keepdims=True)
        return scale * ((x - mean) / jnp.sqrt(var + EPS)) + shift

    def gelu(x):
        return 0.5 * x * (1.0 + jnp.tanh(_SQRT_2_OVER_PI * (x + 0.044715 * x ** 3)))

    def mm(a, b):   # bf16 MXU matmul with f32 accumulation (as in the kernels)
        return jnp.dot(a.astype(bf16), b.astype(bf16), preferred_element_type=jnp.float32)

    x = params["tok_emb"][in_idx] + params["pos_emb"][:T][None, :, :]
    for blk in params["blocks"]:
        shortcut = x
        xn = ln(x, blk["norm1"]["scale"], blk["norm1"]["shift"])
        qkv = mm(xn, blk["w_qkv"]).astype(bf16)
        q, k, v = jnp.split(qkv, 3, axis=-1)
        heads = lambda t: t.reshape(B, T, H, Dh).transpose(0, 2, 1, 3)
        q, k, v = heads(q), heads(k), heads(v)
        qs = (q * (1.0 / math.sqrt(Dh))).astype(bf16)
        s = jnp.einsum("bhqd,bhkd->bhqk", qs, k, preferred_element_type=jnp.float32)
        mask = jnp.triu(jnp.ones((T, T), dtype=bool), k=1)
        s = jnp.where(mask, _NEG_INF, s)
        m = jnp.max(s, axis=-1, keepdims=True)
        p = jnp.exp(s - m)
        l = jnp.sum(p, axis=-1, keepdims=True)
        ctx = jnp.einsum("bhqk,bhkd->bhqd", p.astype(bf16), v,
                         preferred_element_type=jnp.float32) / l
        ctx = ctx.astype(bf16).transpose(0, 2, 1, 3).reshape(B, T, E)
        x = mm(ctx, blk["w_out"]) + blk["b_out"] + shortcut

        shortcut = x
        xn = ln(x, blk["norm2"]["scale"], blk["norm2"]["shift"])
        h = gelu(mm(xn, blk["w_up"]) + blk["b_up"])
        x = mm(h, blk["w_down"]) + blk["b_down"] + shortcut

    x = ln(x, params["final_norm"]["scale"], params["final_norm"]["shift"])
    return mm(x, params["out_head"])


if __name__ == "__main__":
    cfg = dict(vocab_size=128, context_length=16, emb_dim=128, n_heads=4,
               n_layers=2, drop_rate=0.0, qkv_bias=False)
    assert cfg["emb_dim"] % cfg["n_heads"] == 0

    key = jax.random.PRNGKey(0)
    pkey, dkey = jax.random.split(key)
    params = init_gpt_params(pkey, cfg)

    batch, seq = 2, 8
    in_idx = jax.random.randint(dkey, (batch, seq), 0, cfg["vocab_size"], dtype=jnp.int32)

    fwd = jax.jit(lambda p, idx: gpt_forward(p, idx, cfg))
    logits = jax.block_until_ready(fwd(params, in_idx))

    ref = gpt_forward_ref(params, in_idx, cfg)
    assert logits.shape == (batch, seq, cfg["vocab_size"])
    err = float(jnp.max(jnp.abs(logits - ref)))
    assert err < 2e-2, f"mismatch vs reference (max abs err {err})"
    print("KERNEL_OK")
</pallas_src>

<mosaic_0001>
module attributes {stable_mosaic.version = 11 : i64} {
  func.func @_ln_matmul_kernel(%arg0: i32, %arg1: i32, %arg2: memref<16x128xf32, #tpu.memory_space<vmem>>, %arg3: memref<1x128xf32, #tpu.memory_space<vmem>>, %arg4: memref<1x128xf32, #tpu.memory_space<vmem>>, %arg5: memref<128x384xbf16, #tpu.memory_space<vmem>>, %arg6: memref<16x384xbf16, #tpu.memory_space<vmem>>, %arg7: memref<16x128xbf16, #tpu.memory_space<vmem>>) attributes {dimension_semantics = [#tpu.dimension_semantics<parallel>, #tpu.dimension_semantics<arbitrary>], iteration_bounds = array<i64: 1, 1>, scalar_prefetch = 0 : i64, scratch_operands = 1 : i64, tpu.core_type = #tpu.core_type<tc>, window_params = [{transform_indices = @transform_0, window_bounds = array<i64: 16, 128>}, {pipeline_mode = #tpu.pipeline_mode<synchronous>, transform_indices = @transform_1, window_bounds = array<i64: 1, 128>}, {pipeline_mode = #tpu.pipeline_mode<synchronous>, transform_indices = @transform_2, window_bounds = array<i64: 1, 128>}, {transform_indices = @transform_3, window_bounds = array<i64: 128, 384>}, {transform_indices = @transform_4, window_bounds = array<i64: 16, 384>}]} {
    %c0_i32 = arith.constant 0 : i32
    %0 = arith.cmpi eq, %arg1, %c0_i32 : i32
    %1 = arith.extui %0 : i1 to i32
    %c0_i32_0 = arith.constant 0 : i32
    %2 = arith.cmpi ne, %1, %c0_i32_0 : i32
    scf.if %2 {
      %c0_6 = arith.constant 0 : index
      %c0_7 = arith.constant 0 : index
      %8 = vector.load %arg2[%c0_6, %c0_7] : memref<16x128xf32, #tpu.memory_space<vmem>>, vector<16x128xf32>
      %cst_8 = arith.constant dense<0.000000e+00> : vector<16xf32>
      %9 = vector.multi_reduction <add>, %8, %cst_8 [1] : vector<16x128xf32> to vector<16xf32>
      %10 = vector.shape_cast %9 : vector<16xf32> to vector<16x1xf32>
      %cst_9 = arith.constant 1.280000e+02 : f32
      %11 = vector.broadcast %cst_9 : f32 to vector<16x1xf32>
      %12 = arith.divf %10, %11 : vector<16x1xf32>
      %13 = vector.broadcast %12 : vector<16x1xf32> to vector<16x128xf32>
      %14 = arith.subf %8, %13 : vector<16x128xf32>
      %15 = arith.mulf %14, %14 : vector<16x128xf32>
      %cst_10 = arith.constant dense<0.000000e+00> : vector<16xf32>
      %16 = vector.multi_reduction <add>, %15, %cst_10 [1] : vector<16x128xf32> to vector<16xf32>
      %17 = vector.shape_cast %16 : vector<16xf32> to vector<16x1xf32>
      %cst_11 = arith.constant 1.280000e+02 : f32
      %18 = vector.broadcast %cst_11 : f32 to vector<16x1xf32>
      %19 = arith.divf %17, %18 : vector<16x1xf32>
      %cst_12 = arith.constant 9.99999974E-6 : f32
      %20 = vector.broadcast %cst_12 : f32 to vector<16x1xf32>
      %21 = arith.addf %19, %20 : vector<16x1xf32>
      %22 = math.rsqrt %21 : vector<16x1xf32>
      %23 = vector.broadcast %22 : vector<16x1xf32> to vector<16x128xf32>
      %24 = arith.mulf %14, %23 : vector<16x128xf32>
      %c0_13 = arith.constant 0 : index
      %c0_14 = arith.constant 0 : index
      %25 = vector.load %arg3[%c0_13, %c0_14] : memref<1x128xf32, #tpu.memory_space<vmem>>, vector<1x128xf32>
      %26 = vector.broadcast %25 : vector<1x128xf32> to vector<16x128xf32>
      %27 = arith.mulf %24, %26 : vector<16x128xf32>
      %c0_15 = arith.constant 0 : index
      %c0_16 = arith.constant 0 : index
      %28 = vector.load %arg4[%c0_15, %c0_16] : memref<1x128xf32, #tpu.memory_space<vmem>>, vector<1x128xf32>
      %29 = vector.broadcast %28 : vector<1x128xf32> to vector<16x128xf32>
      %30 = arith.addf %27, %29 : vector<16x128xf32>
      %31 = arith.truncf %30 : vector<16x128xf32> to vector<16x128xbf16>
      %c0_17 = arith.constant 0 : index
      %c0_18 = arith.constant 0 : index
      %32 = vector.load %arg7[%c0_17, %c0_18] : memref<16x128xbf16, #tpu.memory_space<vmem>>, vector<16x128xbf16>
      tpu.vector_store %arg7[%c0_17, %c0_18], %31 {strides = array<i32>} : memref<16x128xbf16, #tpu.memory_space<vmem>>, vector<16x128xbf16>,
    } else {
    }
    %c0 = arith.constant 0 : index
    %c0_1 = arith.constant 0 : index
    %3 = vector.load %arg7[%c0, %c0_1] : memref<16x128xbf16, #tpu.memory_space<vmem>>, vector<16x128xbf16>
    %c0_2 = arith.constant 0 : index
    %c0_3 = arith.constant 0 : index
    %4 = vector.load %arg5[%c0_2, %c0_3] : memref<128x384xbf16, #tpu.memory_space<vmem>>, vector<128x384xbf16>
    %cst = arith.constant dense<0.000000e+00> : vector<16x384xf32>
    %5 = tpu.matmul %3, %4, %cst {dimension_numbers = #tpu.dot_dimension_numbers<[1], [0], [0], [1], [0, 0, 1, 1], [], []>} : vector<16x128xbf16>, vector<128x384xbf16>, vector<16x384xf32> -> vector<16x384xf32>
    %6 = arith.truncf %5 : vector<16x384xf32> to vector<16x384xbf16>
    %c0_4 = arith.constant 0 : index
    %c0_5 = arith.constant 0 : index
    %7 = vector.load %arg6[%c0_4, %c0_5] : memref<16x384xbf16, #tpu.memory_space<vmem>>, vector<16x384xbf16>
    tpu.vector_store %arg6[%c0_4, %c0_5], %6 {strides = array<i32>} : memref<16x384xbf16, #tpu.memory_space<vmem>>, vector<16x384xbf16>,
    return
  }
  func.func @transform_0(%arg0: i32, %arg1: i32) -> (i32, i32) {
    %c0_i32 = arith.constant 0 : i32
    %c0_i32_0 = arith.constant 0 : i32
    return %arg0, %c0_i32 : i32, i32
  }
  func.func @transform_1(%arg0: i32, %arg1: i32) -> (i32, i32) {
    %c0_i32 = arith.constant 0 : i32
    %c0_i32_0 = arith.constant 0 : i32
    %c0_i32_1 = arith.constant 0 : i32
    return %c0_i32, %c0_i32_0 : i32, i32
  }
  func.func @transform_2(%arg0: i32, %arg1: i32) -> (i32, i32) {
    %c0_i32 = arith.constant 0 : i32
    %c0_i32_0 = arith.constant 0 : i32
    %c0_i32_1 = arith.constant 0 : i32
    return %c0_i32, %c0_i32_0 : i32, i32
  }
  func.func @transform_3(%arg0: i32, %arg1: i32) -> (i32, i32) {
    %c0_i32 = arith.constant 0 : i32
    %c0_i32_0 = arith.constant 0 : i32
    return %c0_i32, %arg1 : i32, i32
  }
  func.func @transform_4(%arg0: i32, %arg1: i32) -> (i32, i32) {
    %c0_i32 = arith.constant 0 : i32
    return %arg0, %arg1 : i32, i32
  }
}

module attributes {stable_mosaic.version = 11 : i64} {
  func.func @_flash_attn_kernel(%arg0: i32, %arg1: i32, %arg2: i32, %arg3: memref<1x8x32xbf16, #tpu.memory_space<vmem>>, %arg4: memref<1x8x32xbf16, #tpu.memory_space<vmem>>, %arg5: memref<1x8x32xbf16, #tpu.memory_space<vmem>>, %arg6: memref<1x8x32xbf16, #tpu.memory_space<vmem>>, %arg7: memref<8x1xf32, #tpu.memory_space<vmem>>, %arg8: memref<8x1xf32, #tpu.memory_space<vmem>>, %arg9: memref<8x32xf32, #tpu.memory_space<vmem>>) attributes {dimension_semantics = [#tpu.dimension_semantics<parallel>, #tpu.dimension_semantics<parallel>, #tpu.dimension_semantics<arbitrary>], iteration_bounds = array<i64: 8, 1, 1>, scalar_prefetch = 0 : i64, scratch_operands = 3 : i64, tpu.core_type = #tpu.core_type<tc>, window_params = [{transform_indices = @transform_0, window_bounds = array<i64: 1, 8, 32>}, {transform_indices = @transform_1, window_bounds = array<i64: 1, 8, 32>}, {transform_indices = @transform_2, window_bounds = array<i64: 1, 8, 32>}, {transform_indices = @transform_3, window_bounds = array<i64: 1, 8, 32>}]} {
    %c0_i32 = arith.constant 0 : i32
    %0 = arith.cmpi eq, %arg2, %c0_i32 : i32
    %1 = arith.extui %0 : i1 to i32
    %c0_i32_0 = arith.constant 0 : i32
    %2 = arith.cmpi ne, %1, %c0_i32_0 : i32
    scf.if %2 {
      %cst = arith.constant -1.000000e+30 : f32
      %12 = vector.broadcast %cst : f32 to vector<8x1xf32>
      %c0 = arith.constant 0 : index
      %c0_5 = arith.constant 0 : index
      %13 = vector.load %arg7[%c0, %c0_5] : memref<8x1xf32, #tpu.memory_space<vmem>>, vector<8x1xf32>
      tpu.vector_store %arg7[%c0, %c0_5], %12 {strides = array<i32>} : memref<8x1xf32, #tpu.memory_space<vmem>>, vector<8x1xf32>,
      %cst_6 = arith.constant 0.000000e+00 : f32
      %14 = vector.broadcast %cst_6 : f32 to vector<8x1xf32>
      %c0_7 = arith.constant 0 : index
      %c0_8 = arith.constant 0 : index
      %15 = vector.load %arg8[%c0_7, %c0_8] : memref<8x1xf32, #tpu.memory_space<vmem>>, vector<8x1xf32>
      tpu.vector_store %arg8[%c0_7, %c0_8], %14 {strides = array<i32>} : memref<8x1xf32, #tpu.memory_space<vmem>>, vector<8x1xf32>,
      %cst_9 = arith.constant 0.000000e+00 : f32
      %16 = vector.broadcast %cst_9 : f32 to vector<8x32xf32>
      %c0_10 = arith.constant 0 : index
      %c0_11 = arith.constant 0 : index
      %17 = vector.load %arg9[%c0_10, %c0_11] : memref<8x32xf32, #tpu.memory_space<vmem>>, vector<8x32xf32>
      tpu.vector_store %arg9[%c0_10, %c0_11], %16 {strides = array<i32>} : memref<8x32xf32, #tpu.memory_space<vmem>>, vector<8x32xf32>,
    } else {
    }
    %c8_i32 = arith.constant 8 : i32
    %3 = arith.muli %arg2, %c8_i32 : i32
    %c8_i32_1 = arith.constant 8 : i32
    %4 = arith.muli %arg1, %c8_i32_1 : i32
    %c7_i32 = arith.constant 7 : i32
    %5 = arith.addi %4, %c7_i32 : i32
    %6 = arith.cmpi sle, %3, %5 : i32
    %7 = arith.extui %6 : i1 to i32
    %c0_i32_2 = arith.constant 0 : i32
    %8 = arith.cmpi ne, %7, %c0_i32_2 : i32
    scf.if %8 {
      %c0 = arith.constant 0 : index
      %c0_5 = arith.constant 0 : index
      %c0_6 = arith.constant 0 : index
      %12 = vector.load %arg3[%c0, %c0_5, %c0_6] : memref<1x8x32xbf16, #tpu.memory_space<vmem>>, vector<1x8x32xbf16>
      %13 = vector.shape_cast %12 : vector<1x8x32xbf16> to vector<8x32xbf16>
      %cst = arith.constant 1.767580e-01 : bf16
      %14 = vector.broadcast %cst : bf16 to vector<8x32xbf16>
      %15 = arith.mulf %13, %14 : vector<8x32xbf16>
      %c0_7 = arith.constant 0 : index
      %c0_8 = arith.constant 0 : index
      %c0_9 = arith.constant 0 : index
      %16 = vector.load %arg4[%c0_7, %c0_8, %c0_9] : memref<1x8x32xbf16, #tpu.memory_space<vmem>>, vector<1x8x32xbf16>
      %17 = vector.shape_cast %16 : vector<1x8x32xbf16> to vector<8x32xbf16>
      %cst_10 = arith.constant dense<0.000000e+00> : vector<8x8xf32>
      %18 = tpu.matmul %15, %17, %cst_10 {dimension_numbers = #tpu.dot_dimension_numbers<[1], [1], [0], [0], [0, 0, 1, 0], [], []>} : vector<8x32xbf16>, vector<8x32xbf16>, vector<8x8xf32> -> vector<8x8xf32>
      %c8_i32_11 = arith.constant 8 : i32
      %19 = arith.muli %arg1, %c8_i32_11 : i32
      %20 = tpu.iota {dimensions = array<i32: 0>} : vector<8x8xi32>
      %21 = vector.broadcast %19 : i32 to vector<8x8xi32>
      %22 = arith.addi %21, %20 : vector<8x8xi32>
      %c8_i32_12 = arith.constant 8 : i32
      %23 = arith.muli %arg2, %c8_i32_12 : i32
      %24 = tpu.iota {dimensions = array<i32: 1>} : vector<8x8xi32>
      %25 = vector.broadcast %23 : i32 to vector<8x8xi32>
      %26 = arith.addi %25, %24 : vector<8x8xi32>
      %27 = arith.cmpi sgt, %26, %22 : vector<8x8xi32>
      %cst_13 = arith.constant -1.000000e+30 : f32
      %28 = vector.broadcast %cst_13 : f32 to vector<8x8xf32>
      %29 = arith.select %27, %28, %18 : vector<8x8xi1>, vector<8x8xf32>
      %c0_14 = arith.constant 0 : index
      %c0_15 = arith.constant 0 : index
      %30 = vector.load %arg7[%c0_14, %c0_15] : memref<8x1xf32, #tpu.memory_space<vmem>>, vector<8x1xf32>
      %cst_16 = arith.constant dense<0xFF800000> : vector<8xf32>
      %31 = vector.multi_reduction <maximumf>, %29, %cst_16 [1] : vector<8x8xf32> to vector<8xf32>
      %32 = vector.shape_cast %31 : vector<8xf32> to vector<8x1xf32>
      %33 = arith.maximumf %30, %32 : vector<8x1xf32>
      %34 = arith.subf %30, %33 : vector<8x1xf32>
      %35 = math.exp %34 : vector<8x1xf32>
      %36 = vector.broadcast %33 : vector<8x1xf32> to vector<8x8xf32>
      %37 = arith.subf %29, %36 : vector<8x8xf32>
      %38 = math.exp %37 : vector<8x8xf32>
      %c0_17 = arith.constant 0 : index
      %c0_18 = arith.constant 0 : index
      %39 = vector.load %arg8[%c0_17, %c0_18] : memref<8x1xf32, #tpu.memory_space<vmem>>, vector<8x1xf32>
      %40 = arith.mulf %35, %39 : vector<8x1xf32>
      %cst_19 = arith.constant dense<0.000000e+00> : vector<8xf32>
      %41 = vector.multi_reduction <add>, %38, %cst_19 [1] : vector<8x8xf32> to vector<8xf32>
      %42 = vector.shape_cast %41 : vector<8xf32> to vector<8x1xf32>
      %43 = arith.addf %40, %42 : vector<8x1xf32>
      %c0_20 = arith.constant 0 : index
      %c0_21 = arith.constant 0 : index
      %44 = vector.load %arg8[%c0_20, %c0_21] : memref<8x1xf32, #tpu.memory_space<vmem>>, vector<8x1xf32>
      tpu.vector_store %arg8[%c0_20, %c0_21], %43 {strides = array<i32>} : memref<8x1xf32, #tpu.memory_space<vmem>>, vector<8x1xf32>,
      %c0_22 = arith.constant 0 : index
      %c0_23 = arith.constant 0 : index
      %45 = vector.load %arg9[%c0_22, %c0_23] : memref<8x32xf32, #tpu.memory_space<vmem>>, vector<8x32xf32>
      %46 = vector.broadcast %35 : vector<8x1xf32> to vector<8x32xf32>
      %47 = arith.mulf %46, %45 : vector<8x32xf32>
      %48 = arith.truncf %38 : vector<8x8xf32> to vector<8x8xbf16>
      %c0_24 = arith.constant 0 : index
      %c0_25 = arith.constant 0 : index
      %c0_26 = arith.constant 0 : index
      %49 = vector.load %arg5[%c0_24, %c0_25, %c0_26] : memref<1x8x32xbf16, #tpu.memory_space<vmem>>, vector<1x8x32xbf16>
      %50 = vector.shape_cast %49 : vector<1x8x32xbf16> to vector<8x32xbf16>
      %cst_27 = arith.constant dense<0.000000e+00> : vector<8x32xf32>
      %51 = tpu.matmul %48, %50, %cst_27 {dimension_numbers = #tpu.dot_dimension_numbers<[1], [0], [0], [1], [0, 0, 1, 1], [], []>} : vector<8x8xbf16>, vector<8x32xbf16>, vector<8x32xf32> -> vector<8x32xf32>
      %52 = arith.addf %47, %51 : vector<8x32xf32>
      %c0_28 = arith.constant 0 : index
      %c0_29 = arith.constant 0 : index
      %53 = vector.load %arg9[%c0_28, %c0_29] : memref<8x32xf32, #tpu.memory_space<vmem>>, vector<8x32xf32>
      tpu.vector_store %arg9[%c0_28, %c0_29], %52 {strides = array<i32>} : memref<8x32xf32, #tpu.memory_space<vmem>>, vector<8x32xf32>,
      %c0_30 = arith.constant 0 : index
      %c0_31 = arith.constant 0 : index
      %54 = vector.load %arg7[%c0_30, %c0_31] : memref<8x1xf32, #tpu.memory_space<vmem>>, vector<8x1xf32>
      tpu.vector_store %arg7[%c0_30, %c0_31], %33 {strides = array<i32>} : memref<8x1xf32, #tpu.memory_space<vmem>>, vector<8x1xf32>,
    } else {
    }
    %c0_i32_3 = arith.constant 0 : i32
    %9 = arith.cmpi eq, %arg2, %c0_i32_3 : i32
    %10 = arith.extui %9 : i1 to i32
    %c0_i32_4 = arith.constant 0 : i32
    %11 = arith.cmpi ne, %10, %c0_i32_4 : i32
    scf.if %11 {
      %c0 = arith.constant 0 : index
      %c0_5 = arith.constant 0 : index
      %12 = vector.load %arg8[%c0, %c0_5] : memref<8x1xf32, #tpu.memory_space<vmem>>, vector<8x1xf32>
      %13 = tpu.reciprocal %12 {approx = true} : vector<8x1xf32> -> vector<8x1xf32>
      %c0_6 = arith.constant 0 : index
      %c0_7 = arith.constant 0 : index
      %14 = vector.load %arg9[%c0_6, %c0_7] : memref<8x32xf32, #tpu.memory_space<vmem>>, vector<8x32xf32>
      %15 = vector.broadcast %13 : vector<8x1xf32> to vector<8x32xf32>
      %16 = arith.mulf %14, %15 : vector<8x32xf32>
      %17 = arith.truncf %16 : vector<8x32xf32> to vector<8x32xbf16>
      %c0_8 = arith.constant 0 : index
      %c0_9 = arith.constant 0 : index
      %c0_10 = arith.constant 0 : index
      %18 = vector.load %arg6[%c0_8, %c0_9, %c0_10] : memref<1x8x32xbf16, #tpu.memory_space<vmem>>, vector<1x8x32xbf16>
      %19 = vector.shape_cast %18 : vector<1x8x32xbf16> to vector<8x32xbf16>
      %20 = vector.shape_cast %17 : vector<8x32xbf16> to vector<1x8x32xbf16>
      tpu.vector_store %arg6[%c0_8, %c0_9, %c0_10], %20 {strides = array<i32>} : memref<1x8x32xbf16, #tpu.memory_space<vmem>>, vector<1x8x32xbf16>,
    } else {
    }
    return
  }
  func.func @transform_0(%arg0: i32, %arg1: i32, %arg2: i32) -> (i32, i32, i32) {
    %c0_i32 = arith.constant 0 : i32
    %c0_i32_0 = arith.constant 0 : i32
    return %arg0, %arg1, %c0_i32 : i32, i32, i32
  }
  func.func @transform_1(%arg0: i32, %arg1: i32, %arg2: i32) -> (i32, i32, i32) {
    %c0_i32 = arith.constant 0 : i32
    %c0_i32_0 = arith.constant 0 : i32
    return %arg0, %arg2, %c0_i32 : i32, i32, i32
  }
  func.func @transform_2(%arg0: i32, %arg1: i32, %arg2: i32) -> (i32, i32, i32) {
    %c0_i32 = arith.constant 0 : i32
    %c0_i32_0 = arith.constant 0 : i32
    return %arg0, %arg2, %c0_i32 : i32, i32, i32
  }
  func.func @transform_3(%arg0: i32, %arg1: i32, %arg2: i32) -> (i32, i32, i32) {
    %c0_i32 = arith.constant 0 : i32
    %c0_i32_0 = arith.constant 0 : i32
    return %arg0, %arg1, %c0_i32 : i32, i32, i32
  }
}

module attributes {stable_mosaic.version = 11 : i64} {
  func.func @_matmul_bias_res_kernel(%arg0: i32, %arg1: i32, %arg2: i32, %arg3: memref<16x128xbf16, #tpu.memory_space<vmem>>, %arg4: memref<128x128xbf16, #tpu.memory_space<vmem>>, %arg5: memref<1x128xf32, #tpu.memory_space<vmem>>, %arg6: memref<16x128xf32, #tpu.memory_space<vmem>>, %arg7: memref<16x128xf32, #tpu.memory_space<vmem>>, %arg8: memref<16x128xf32, #tpu.memory_space<vmem>>) attributes {dimension_semantics = [#tpu.dimension_semantics<parallel>, #tpu.dimension_semantics<parallel>, #tpu.dimension_semantics<arbitrary>], iteration_bounds = array<i64: 1, 1, 1>, scalar_prefetch = 0 : i64, scratch_operands = 1 : i64, tpu.core_type = #tpu.core_type<tc>, window_params = [{transform_indices = @transform_0, window_bounds = array<i64: 16, 128>}, {transform_indices = @transform_1, window_bounds = array<i64: 128, 128>}, {transform_indices = @transform_2, window_bounds = array<i64: 1, 128>}, {transform_indices = @transform_3, window_bounds = array<i64: 16, 128>}, {transform_indices = @transform_4, window_bounds = array<i64: 16, 128>}]} {
    %c0_i32 = arith.constant 0 : i32
    %0 = arith.cmpi eq, %arg2, %c0_i32 : i32
    %1 = arith.extui %0 : i1 to i32
    %c0_i32_0 = arith.constant 0 : i32
    %2 = arith.cmpi ne, %1, %c0_i32_0 : i32
    scf.if %2 {
      %cst_10 = arith.constant 0.000000e+00 : f32
      %12 = vector.broadcast %cst_10 : f32 to vector<16x128xf32>
      %c0_11 = arith.constant 0 : index
      %c0_12 = arith.constant 0 : index
      %13 = vector.load %arg8[%c0_11, %c0_12] : memref<16x128xf32, #tpu.memory_space<vmem>>, vector<16x128xf32>
      tpu.vector_store %arg8[%c0_11, %c0_12], %12 {strides = array<i32>} : memref<16x128xf32, #tpu.memory_space<vmem>>, vector<16x128xf32>,
    } else {
    }
    %c0 = arith.constant 0 : index
    %c0_1 = arith.constant 0 : index
    %3 = vector.load %arg8[%c0, %c0_1] : memref<16x128xf32, #tpu.memory_space<vmem>>, vector<16x128xf32>
    %c0_2 = arith.constant 0 : index
    %c0_3 = arith.constant 0 : index
    %4 = vector.load %arg3[%c0_2, %c0_3] : memref<16x128xbf16, #tpu.memory_space<vmem>>, vector<16x128xbf16>
    %c0_4 = arith.constant 0 : index
    %c0_5 = arith.constant 0 : index
    %5 = vector.load %arg4[%c0_4, %c0_5] : memref<128x128xbf16, #tpu.memory_space<vmem>>, vector<128x128xbf16>
    %cst = arith.constant dense<0.000000e+00> : vector<16x128xf32>
    %6 = tpu.matmul %4, %5, %cst {dimension_numbers = #tpu.dot_dimension_numbers<[1], [0], [0], [1], [0, 0, 1, 1], [], []>} : vector<16x128xbf16>, vector<128x128xbf16>, vector<16x128xf32> -> vector<16x128xf32>
    %7 = arith.addf %3, %6 : vector<16x128xf32>
    %c0_6 = arith.constant 0 : index
    %c0_7 = arith.constant 0 : index
    %8 = vector.load %arg8[%c0_6, %c0_7] : memref<16x128xf32, #tpu.memory_space<vmem>>, vector<16x128xf32>
    tpu.vector_store %arg8[%c0_6, %c0_7], %7 {strides = array<i32>} : memref<16x128xf32, #tpu.memory_space<vmem>>, vector<16x128xf32>,
    %c0_i32_8 = arith.constant 0 : i32
    %9 = arith.cmpi eq, %arg2, %c0_i32_8 : i32
    %10 = arith.extui %9 : i1 to i32
    %c0_i32_9 = arith.constant 0 : i32
    %11 = arith.cmpi ne, %10, %c0_i32_9 : i32
    scf.if %11 {
      %c0_10 = arith.constant 0 : index
      %c0_11 = arith.constant 0 : index
      %12 = vector.load %arg8[%c0_10, %c0_11] : memref<16x128xf32, #tpu.memory_space<vmem>>, vector<16x128xf32>
      %c0_12 = arith.constant 0 : index
      %c0_13 = arith.constant 0 : index
      %13 = vector.load %arg5[%c0_12, %c0_13] : memref<1x128xf32, #tpu.memory_space<vmem>>, vector<1x128xf32>
      %14 = vector.broadcast %13 : vector<1x128xf32> to vector<16x128xf32>
      %15 = arith.addf %12, %14 : vector<16x128xf32>
      %c0_14 = arith.constant 0 : index
      %c0_15 = arith.constant 0 : index
      %16 = vector.load %arg6[%c0_14, %c0_15] : memref<16x128xf32, #tpu.memory_space<vmem>>, vector<16x128xf32>
      %17 = arith.addf %15, %16 : vector<16x128xf32>
      %c0_16 = arith.constant 0 : index
      %c0_17 = arith.constant 0 : index
      %18 = vector.load %arg7[%c0_16, %c0_17] : memref<16x128xf32, #tpu.memory_space<vmem>>, vector<16x128xf32>
      tpu.vector_store %arg7[%c0_16, %c0_17], %17 {strides = array<i32>} : memref<16x128xf32, #tpu.memory_space<vmem>>, vector<16x128xf32>,
    } else {
    }
    return
  }
  func.func @transform_0(%arg0: i32, %arg1: i32, %arg2: i32) -> (i32, i32) {
    %c0_i32 = arith.constant 0 : i32
    return %arg0, %arg2 : i32, i32
  }
  func.func @transform_1(%arg0: i32, %arg1: i32, %arg2: i32) -> (i32, i32) {
    %c0_i32 = arith.constant 0 : i32
    return %arg2, %arg1 : i32, i32
  }
  func.func @transform_2(%arg0: i32, %arg1: i32, %arg2: i32) -> (i32, i32) {
    %c0_i32 = arith.constant 0 : i32
    %c0_i32_0 = arith.constant 0 : i32
    return %c0_i32, %arg1 : i32, i32
  }
  func.func @transform_3(%arg0: i32, %arg1: i32, %arg2: i32) -> (i32, i32) {
    %c0_i32 = arith.constant 0 : i32
    return %arg0, %arg1 : i32, i32
  }
  func.func @transform_4(%arg0: i32, %arg1: i32, %arg2: i32) -> (i32, i32) {
    %c0_i32 = arith.constant 0 : i32
    return %arg0, %arg1 : i32, i32
  }
}

module attributes {stable_mosaic.version = 11 : i64} {
  func.func @_ln_matmul_kernel(%arg0: i32, %arg1: i32, %arg2: memref<16x128xf32, #tpu.memory_space<vmem>>, %arg3: memref<1x128xf32, #tpu.memory_space<vmem>>, %arg4: memref<1x128xf32, #tpu.memory_space<vmem>>, %arg5: memref<128x512xbf16, #tpu.memory_space<vmem>>, %arg6: memref<1x512xf32, #tpu.memory_space<vmem>>, %arg7: memref<16x512xbf16, #tpu.memory_space<vmem>>, %arg8: memref<16x128xbf16, #tpu.memory_space<vmem>>) attributes {dimension_semantics = [#tpu.dimension_semantics<parallel>, #tpu.dimension_semantics<arbitrary>], iteration_bounds = array<i64: 1, 1>, scalar_prefetch = 0 : i64, scratch_operands = 1 : i64, tpu.core_type = #tpu.core_type<tc>, window_params = [{transform_indices = @transform_0, window_bounds = array<i64: 16, 128>}, {pipeline_mode = #tpu.pipeline_mode<synchronous>, transform_indices = @transform_1, window_bounds = array<i64: 1, 128>}, {pipeline_mode = #tpu.pipeline_mode<synchronous>, transform_indices = @transform_2, window_bounds = array<i64: 1, 128>}, {transform_indices = @transform_3, window_bounds = array<i64: 128, 512>}, {transform_indices = @transform_4, window_bounds = array<i64: 1, 512>}, {transform_indices = @transform_5, window_bounds = array<i64: 16, 512>}]} {
    %c0_i32 = arith.constant 0 : i32
    %0 = arith.cmpi eq, %arg1, %c0_i32 : i32
    %1 = arith.extui %0 : i1 to i32
    %c0_i32_0 = arith.constant 0 : i32
    %2 = arith.cmpi ne, %1, %c0_i32_0 : i32
    scf.if %2 {
      %c0_12 = arith.constant 0 : index
      %c0_13 = arith.constant 0 : index
      %24 = vector.load %arg2[%c0_12, %c0_13] : memref<16x128xf32, #tpu.memory_space<vmem>>, vector<16x128xf32>
      %cst_14 = arith.constant dense<0.000000e+00> : vector<16xf32>
      %25 = vector.multi_reduction <add>, %24, %cst_14 [1] : vector<16x128xf32> to vector<16xf32>
      %26 = vector.shape_cast %25 : vector<16xf32> to vector<16x1xf32>
      %cst_15 = arith.constant 1.280000e+02 : f32
      %27 = vector.broadcast %cst_15 : f32 to vector<16x1xf32>
      %28 = arith.divf %26, %27 : vector<16x1xf32>
      %29 = vector.broadcast %28 : vector<16x1xf32> to vector<16x128xf32>
      %30 = arith.subf %24, %29 : vector<16x128xf32>
      %31 = arith.mulf %30, %30 : vector<16x128xf32>
      %cst_16 = arith.constant dense<0.000000e+00> : vector<16xf32>
      %32 = vector.multi_reduction <add>, %31, %cst_16 [1] : vector<16x128xf32> to vector<16xf32>
      %33 = vector.shape_cast %32 : vector<16xf32> to vector<16x1xf32>
      %cst_17 = arith.constant 1.280000e+02 : f32
      %34 = vector.broadcast %cst_17 : f32 to vector<16x1xf32>
      %35 = arith.divf %33, %34 : vector<16x1xf32>
      %cst_18 = arith.constant 9.99999974E-6 : f32
      %36 = vector.broadcast %cst_18 : f32 to vector<16x1xf32>
      %37 = arith.addf %35, %36 : vector<16x1xf32>
      %38 = math.rsqrt %37 : vector<16x1xf32>
      %39 = vector.broadcast %38 : vector<16x1xf32> to vector<16x128xf32>
      %40 = arith.mulf %30, %39 : vector<16x128xf32>
      %c0_19 = arith.constant 0 : index
      %c0_20 = arith.constant 0 : index
      %41 = vector.load %arg3[%c0_19, %c0_20] : memref<1x128xf32, #tpu.memory_space<vmem>>, vector<1x128xf32>
      %42 = vector.broadcast %41 : vector<1x128xf32> to vector<16x128xf32>
      %43 = arith.mulf %40, %42 : vector<16x128xf32>
      %c0_21 = arith.constant 0 : index
      %c0_22 = arith.constant 0 : index
      %44 = vector.load %arg4[%c0_21, %c0_22] : memref<1x128xf32, #tpu.memory_space<vmem>>, vector<1x128xf32>
      %45 = vector.broadcast %44 : vector<1x128xf32> to vector<16x128xf32>
      %46 = arith.addf %43, %45 : vector<16x128xf32>
      %47 = arith.truncf %46 : vector<16x128xf32> to vector<16x128xbf16>
      %c0_23 = arith.constant 0 : index
      %c0_24 = arith.constant 0 : index
      %48 = vector.load %arg8[%c0_23, %c0_24] : memref<16x128xbf16, #tpu.memory_space<vmem>>, vector<16x128xbf16>
      tpu.vector_store %arg8[%c0_23, %c0_24], %47 {strides = array<i32>} : memref<16x128xbf16, #tpu.memory_space<vmem>>, vector<16x128xbf16>,
    } else {
    }
    %c0 = arith.constant 0 : index
    %c0_1 = arith.constant 0 : index
    %3 = vector.load %arg8[%c0, %c0_1] : memref<16x128xbf16, #tpu.memory_space<vmem>>, vector<16x128xbf16>
    %c0_2 = arith.constant 0 : index
    %c0_3 = arith.constant 0 : index
    %4 = vector.load %arg5[%c0_2, %c0_3] : memref<128x512xbf16, #tpu.memory_space<vmem>>, vector<128x512xbf16>
    %cst = arith.constant dense<0.000000e+00> : vector<16x512xf32>
    %5 = tpu.matmul %3, %4, %cst {dimension_numbers = #tpu.dot_dimension_numbers<[1], [0], [0], [1], [0, 0, 1, 1], [], []>} : vector<16x128xbf16>, vector<128x512xbf16>, vector<16x512xf32> -> vector<16x512xf32>
    %c0_4 = arith.constant 0 : index
    %c0_5 = arith.constant 0 : index
    %6 = vector.load %arg6[%c0_4, %c0_5] : memref<1x512xf32, #tpu.memory_space<vmem>>, vector<1x512xf32>
    %7 = vector.broadcast %6 : vector<1x512xf32> to vector<16x512xf32>
    %8 = arith.addf %5, %7 : vector<16x512xf32>
    %cst_6 = arith.constant 5.000000e-01 : f32
    %9 = vector.broadcast %cst_6 : f32 to vector<16x512xf32>
    %10 = arith.mulf %9, %8 : vector<16x512xf32>
    %cst_7 = arith.constant 4.471500e-02 : f32
    %11 = vector.broadcast %cst_7 : f32 to vector<16x512xf32>
    %12 = arith.mulf %11, %8 : vector<16x512xf32>
    %13 = arith.mulf %12, %8 : vector<16x512xf32>
    %14 = arith.mulf %13, %8 : vector<16x512xf32>
    %15 = arith.addf %8, %14 : vector<16x512xf32>
    %cst_8 = arith.constant 0.797884583 : f32
    %16 = vector.broadcast %cst_8 : f32 to vector<16x512xf32>
    %17 = arith.mulf %16, %15 : vector<16x512xf32>
    %18 = math.tanh %17 : vector<16x512xf32>
    %cst_9 = arith.constant 1.000000e+00 : f32
    %19 = vector.broadcast %cst_9 : f32 to vector<16x512xf32>
    %20 = arith.addf %19, %18 : vector<16x512xf32>
    %21 = arith.mulf %10, %20 : vector<16x512xf32>
    %22 = arith.truncf %21 : vector<16x512xf32> to vector<16x512xbf16>
    %c0_10 = arith.constant 0 : index
    %c0_11 = arith.constant 0 : index
    %23 = vector.load %arg7[%c0_10, %c0_11] : memref<16x512xbf16, #tpu.memory_space<vmem>>, vector<16x512xbf16>
    tpu.vector_store %arg7[%c0_10, %c0_11], %22 {strides = array<i32>} : memref<16x512xbf16, #tpu.memory_space<vmem>>, vector<16x512xbf16>,
    return
  }
  func.func @transform_0(%arg0: i32, %arg1: i32) -> (i32, i32) {
    %c0_i32 = arith.constant 0 : i32
    %c0_i32_0 = arith.constant 0 : i32
    return %arg0, %c0_i32 : i32, i32
  }
  func.func @transform_1(%arg0: i32, %arg1: i32) -> (i32, i32) {
    %c0_i32 = arith.constant 0 : i32
    %c0_i32_0 = arith.constant 0 : i32
    %c0_i32_1 = arith.constant 0 : i32
    return %c0_i32, %c0_i32_0 : i32, i32
  }
  func.func @transform_2(%arg0: i32, %arg1: i32) -> (i32, i32) {
    %c0_i32 = arith.constant 0 : i32
    %c0_i32_0 = arith.constant 0 : i32
    %c0_i32_1 = arith.constant 0 : i32
    return %c0_i32, %c0_i32_0 : i32, i32
  }
  func.func @transform_3(%arg0: i32, %arg1: i32) -> (i32, i32) {
    %c0_i32 = arith.constant 0 : i32
    %c0_i32_0 = arith.constant 0 : i32
    return %c0_i32, %arg1 : i32, i32
  }
  func.func @transform_4(%arg0: i32, %arg1: i32) -> (i32, i32) {
    %c0_i32 = arith.constant 0 : i32
    %c0_i32_0 = arith.constant 0 : i32
    return %c0_i32, %arg1 : i32, i32
  }
  func.func @transform_5(%arg0: i32, %arg1: i32) -> (i32, i32) {
    %c0_i32 = arith.constant 0 : i32
    return %arg0, %arg1 : i32, i32
  }
}

module attributes {stable_mosaic.version = 11 : i64} {
  func.func @_matmul_bias_res_kernel(%arg0: i32, %arg1: i32, %arg2: i32, %arg3: memref<16x512xbf16, #tpu.memory_space<vmem>>, %arg4: memref<512x128xbf16, #tpu.memory_space<vmem>>, %arg5: memref<1x128xf32, #tpu.memory_space<vmem>>, %arg6: memref<16x128xf32, #tpu.memory_space<vmem>>, %arg7: memref<16x128xf32, #tpu.memory_space<vmem>>, %arg8: memref<16x128xf32, #tpu.memory_space<vmem>>) attributes {dimension_semantics = [#tpu.dimension_semantics<parallel>, #tpu.dimension_semantics<parallel>, #tpu.dimension_semantics<arbitrary>], iteration_bounds = array<i64: 1, 1, 1>, scalar_prefetch = 0 : i64, scratch_operands = 1 : i64, tpu.core_type = #tpu.core_type<tc>, window_params = [{transform_indices = @transform_0, window_bounds = array<i64: 16, 512>}, {transform_indices = @transform_1, window_bounds = array<i64: 512, 128>}, {transform_indices = @transform_2, window_bounds = array<i64: 1, 128>}, {transform_indices = @transform_3, window_bounds = array<i64: 16, 128>}, {transform_indices = @transform_4, window_bounds = array<i64: 16, 128>}]} {
    %c0_i32 = arith.constant 0 : i32
    %0 = arith.cmpi eq, %arg2, %c0_i32 : i32
    %1 = arith.extui %0 : i1 to i32
    %c0_i32_0 = arith.constant 0 : i32
    %2 = arith.cmpi ne, %1, %c0_i32_0 : i32
    scf.if %2 {
      %cst_10 = arith.constant 0.000000e+00 : f32
      %12 = vector.broadcast %cst_10 : f32 to vector<16x128xf32>
      %c0_11 = arith.constant 0 : index
      %c0_12 = arith.constant 0 : index
      %13 = vector.load %arg8[%c0_11, %c0_12] : memref<16x128xf32, #tpu.memory_space<vmem>>, vector<16x128xf32>
      tpu.vector_store %arg8[%c0_11, %c0_12], %12 {strides = array<i32>} : memref<16x128xf32, #tpu.memory_space<vmem>>, vector<16x128xf32>,
    } else {
    }
    %c0 = arith.constant 0 : index
    %c0_1 = arith.constant 0 : index
    %3 = vector.load %arg8[%c0, %c0_1] : memref<16x128xf32, #tpu.memory_space<vmem>>, vector<16x128xf32>
    %c0_2 = arith.constant 0 : index
    %c0_3 = arith.constant 0 : index
    %4 = vector.load %arg3[%c0_2, %c0_3] : memref<16x512xbf16, #tpu.memory_space<vmem>>, vector<16x512xbf16>
    %c0_4 = arith.constant 0 : index
    %c0_5 = arith.constant 0 : index
    %5 = vector.load %arg4[%c0_4, %c0_5] : memref<512x128xbf16, #tpu.memory_space<vmem>>, vector<512x128xbf16>
    %cst = arith.constant dense<0.000000e+00> : vector<16x128xf32>
    %6 = tpu.matmul %4, %5, %cst {dimension_numbers = #tpu.dot_dimension_numbers<[1], [0], [0], [1], [0, 0, 1, 1], [], []>} : vector<16x512xbf16>, vector<512x128xbf16>, vector<16x128xf32> -> vector<16x128xf32>
    %7 = arith.addf %3, %6 : vector<16x128xf32>
    %c0_6 = arith.constant 0 : index
    %c0_7 = arith.constant 0 : index
    %8 = vector.load %arg8[%c0_6, %c0_7] : memref<16x128xf32, #tpu.memory_space<vmem>>, vector<16x128xf32>
    tpu.vector_store %arg8[%c0_6, %c0_7], %7 {strides = array<i32>} : memref<16x128xf32, #tpu.memory_space<vmem>>, vector<16x128xf32>,
    %c0_i32_8 = arith.constant 0 : i32
    %9 = arith.cmpi eq, %arg2, %c0_i32_8 : i32
    %10 = arith.extui %9 : i1 to i32
    %c0_i32_9 = arith.constant 0 : i32
    %11 = arith.cmpi ne, %10, %c0_i32_9 : i32
    scf.if %11 {
      %c0_10 = arith.constant 0 : index
      %c0_11 = arith.constant 0 : index
      %12 = vector.load %arg8[%c0_10, %c0_11] : memref<16x128xf32, #tpu.memory_space<vmem>>, vector<16x128xf32>
      %c0_12 = arith.constant 0 : index
      %c0_13 = arith.constant 0 : index
      %13 = vector.load %arg5[%c0_12, %c0_13] : memref<1x128xf32, #tpu.memory_space<vmem>>, vector<1x128xf32>
      %14 = vector.broadcast %13 : vector<1x128xf32> to vector<16x128xf32>
      %15 = arith.addf %12, %14 : vector<16x128xf32>
      %c0_14 = arith.constant 0 : index
      %c0_15 = arith.constant 0 : index
      %16 = vector.load %arg6[%c0_14, %c0_15] : memref<16x128xf32, #tpu.memory_space<vmem>>, vector<16x128xf32>
      %17 = arith.addf %15, %16 : vector<16x128xf32>
      %c0_16 = arith.constant 0 : index
      %c0_17 = arith.constant 0 : index
      %18 = vector.load %arg7[%c0_16, %c0_17] : memref<16x128xf32, #tpu.memory_space<vmem>>, vector<16x128xf32>
      tpu.vector_store %arg7[%c0_16, %c0_17], %17 {strides = array<i32>} : memref<16x128xf32, #tpu.memory_space<vmem>>, vector<16x128xf32>,
    } else {
    }
    return
  }
  func.func @transform_0(%arg0: i32, %arg1: i32, %arg2: i32) -> (i32, i32) {
    %c0_i32 = arith.constant 0 : i32
    return %arg0, %arg2 : i32, i32
  }
  func.func @transform_1(%arg0: i32, %arg1: i32, %arg2: i32) -> (i32, i32) {
    %c0_i32 = arith.constant 0 : i32
    return %arg2, %arg1 : i32, i32
  }
  func.func @transform_2(%arg0: i32, %arg1: i32, %arg2: i32) -> (i32, i32) {
    %c0_i32 = arith.constant 0 : i32
    %c0_i32_0 = arith.constant 0 : i32
    return %c0_i32, %arg1 : i32, i32
  }
  func.func @transform_3(%arg0: i32, %arg1: i32, %arg2: i32) -> (i32, i32) {
    %c0_i32 = arith.constant 0 : i32
    return %arg0, %arg1 : i32, i32
  }
  func.func @transform_4(%arg0: i32, %arg1: i32, %arg2: i32) -> (i32, i32) {
    %c0_i32 = arith.constant 0 : i32
    return %arg0, %arg1 : i32, i32
  }
}

module attributes {stable_mosaic.version = 11 : i64} {
  func.func @_ln_matmul_kernel(%arg0: i32, %arg1: i32, %arg2: memref<16x128xf32, #tpu.memory_space<vmem>>, %arg3: memref<1x128xf32, #tpu.memory_space<vmem>>, %arg4: memref<1x128xf32, #tpu.memory_space<vmem>>, %arg5: memref<128x128xbf16, #tpu.memory_space<vmem>>, %arg6: memref<16x128xf32, #tpu.memory_space<vmem>>, %arg7: memref<16x128xbf16, #tpu.memory_space<vmem>>) attributes {dimension_semantics = [#tpu.dimension_semantics<parallel>, #tpu.dimension_semantics<arbitrary>], iteration_bounds = array<i64: 1, 1>, scalar_prefetch = 0 : i64, scratch_operands = 1 : i64, tpu.core_type = #tpu.core_type<tc>, window_params = [{transform_indices = @transform_0, window_bounds = array<i64: 16, 128>}, {pipeline_mode = #tpu.pipeline_mode<synchronous>, transform_indices = @transform_1, window_bounds = array<i64: 1, 128>}, {pipeline_mode = #tpu.pipeline_mode<synchronous>, transform_indices = @transform_2, window_bounds = array<i64: 1, 128>}, {transform_indices = @transform_3, window_bounds = array<i64: 128, 128>}, {transform_indices = @transform_4, window_bounds = array<i64: 16, 128>}]} {
    %c0_i32 = arith.constant 0 : i32
    %0 = arith.cmpi eq, %arg1, %c0_i32 : i32
    %1 = arith.extui %0 : i1 to i32
    %c0_i32_0 = arith.constant 0 : i32
    %2 = arith.cmpi ne, %1, %c0_i32_0 : i32
    scf.if %2 {
      %c0_6 = arith.constant 0 : index
      %c0_7 = arith.constant 0 : index
      %7 = vector.load %arg2[%c0_6, %c0_7] : memref<16x128xf32, #tpu.memory_space<vmem>>, vector<16x128xf32>
      %cst_8 = arith.constant dense<0.000000e+00> : vector<16xf32>
      %8 = vector.multi_reduction <add>, %7, %cst_8 [1] : vector<16x128xf32> to vector<16xf32>
      %9 = vector.shape_cast %8 : vector<16xf32> to vector<16x1xf32>
      %cst_9 = arith.constant 1.280000e+02 : f32
      %10 = vector.broadcast %cst_9 : f32 to vector<16x1xf32>
      %11 = arith.divf %9, %10 : vector<16x1xf32>
      %12 = vector.broadcast %11 : vector<16x1xf32> to vector<16x128xf32>
      %13 = arith.subf %7, %12 : vector<16x128xf32>
      %14 = arith.mulf %13, %13 : vector<16x128xf32>
      %cst_10 = arith.constant dense<0.000000e+00> : vector<16xf32>
      %15 = vector.multi_reduction <add>, %14, %cst_10 [1] : vector<16x128xf32> to vector<16xf32>
      %16 = vector.shape_cast %15 : vector<16xf32> to vector<16x1xf32>
      %cst_11 = arith.constant 1.280000e+02 : f32
      %17 = vector.broadcast %cst_11 : f32 to vector<16x1xf32>
      %18 = arith.divf %16, %17 : vector<16x1xf32>
      %cst_12 = arith.constant 9.99999974E-6 : f32
      %19 = vector.broadcast %cst_12 : f32 to vector<16x1xf32>
      %20 = arith.addf %18, %19 : vector<16x1xf32>
      %21 = math.rsqrt %20 : vector<16x1xf32>
      %22 = vector.broadcast %21 : vector<16x1xf32> to vector<16x128xf32>
      %23 = arith.mulf %13, %22 : vector<16x128xf32>
      %c0_13 = arith.constant 0 : index
      %c0_14 = arith.constant 0 : index
      %24 = vector.load %arg3[%c0_13, %c0_14] : memref<1x128xf32, #tpu.memory_space<vmem>>, vector<1x128xf32>
      %25 = vector.broadcast %24 : vector<1x128xf32> to vector<16x128xf32>
      %26 = arith.mulf %23, %25 : vector<16x128xf32>
      %c0_15 = arith.constant 0 : index
      %c0_16 = arith.constant 0 : index
      %27 = vector.load %arg4[%c0_15, %c0_16] : memref<1x128xf32, #tpu.memory_space<vmem>>, vector<1x128xf32>
      %28 = vector.broadcast %27 : vector<1x128xf32> to vector<16x128xf32>
      %29 = arith.addf %26, %28 : vector<16x128xf32>
      %30 = arith.truncf %29 : vector<16x128xf32> to vector<16x128xbf16>
      %c0_17 = arith.constant 0 : index
      %c0_18 = arith.constant 0 : index
      %31 = vector.load %arg7[%c0_17, %c0_18] : memref<16x128xbf16, #tpu.memory_space<vmem>>, vector<16x128xbf16>
      tpu.vector_store %arg7[%c0_17, %c0_18], %30 {strides = array<i32>} : memref<16x128xbf16, #tpu.memory_space<vmem>>, vector<16x128xbf16>,
    } else {
    }
    %c0 = arith.constant 0 : index
    %c0_1 = arith.constant 0 : index
    %3 = vector.load %arg7[%c0, %c0_1] : memref<16x128xbf16, #tpu.memory_space<vmem>>, vector<16x128xbf16>
    %c0_2 = arith.constant 0 : index
    %c0_3 = arith.constant 0 : index
    %4 = vector.load %arg5[%c0_2, %c0_3] : memref<128x128xbf16, #tpu.memory_space<vmem>>, vector<128x128xbf16>
    %cst = arith.constant dense<0.000000e+00> : vector<16x128xf32>
    %5 = tpu.matmul %3, %4, %cst {dimension_numbers = #tpu.dot_dimension_numbers<[1], [0], [0], [1], [0, 0, 1, 1], [], []>} : vector<16x128xbf16>, vector<128x128xbf16>, vector<16x128xf32> -> vector<16x128xf32>
    %c0_4 = arith.constant 0 : index
    %c0_5 = arith.constant 0 : index
    %6 = vector.load %arg6[%c0_4, %c0_5] : memref<16x128xf32, #tpu.memory_space<vmem>>, vector<16x128xf32>
    tpu.vector_store %arg6[%c0_4, %c0_5], %5 {strides = array<i32>} : memref<16x128xf32, #tpu.memory_space<vmem>>, vector<16x128xf32>,
    return
  }
  func.func @transform_0(%arg0: i32, %arg1: i32) -> (i32, i32) {
    %c0_i32 = arith.constant 0 : i32
    %c0_i32_0 = arith.constant 0 : i32
    return %arg0, %c0_i32 : i32, i32
  }
  func.func @transform_1(%arg0: i32, %arg1: i32) -> (i32, i32) {
    %c0_i32 = arith.constant 0 : i32
    %c0_i32_0 = arith.constant 0 : i32
    %c0_i32_1 = arith.constant 0 : i32
    return %c0_i32, %c0_i32_0 : i32, i32
  }
  func.func @transform_2(%arg0: i32, %arg1: i32) -> (i32, i32) {
    %c0_i32 = arith.constant 0 : i32
    %c0_i32_0 = arith.constant 0 : i32
    %c0_i32_1 = arith.constant 0 : i32
    return %c0_i32, %c0_i32_0 : i32, i32
  }
  func.func @transform_3(%arg0: i32, %arg1: i32) -> (i32, i32) {
    %c0_i32 = arith.constant 0 : i32
    %c0_i32_0 = arith.constant 0 : i32
    return %c0_i32, %arg1 : i32, i32
  }
  func.func @transform_4(%arg0: i32, %arg1: i32) -> (i32, i32) {
    %c0_i32 = arith.constant 0 : i32
    return %arg0, %arg1 : i32, i32
  }
}

</mosaic_0001>

<bundles_post_ra>
// kernel: _lambda_.12
= control target key start
LH: loop header
LB: loop body
LE: loop exit
PB: predicated region body
PF: predicated region fallthrough
CT: control target
= control target key end

     0   :  { %s657_s12 = smov 0   ;;  %s659_s13 = smov 0   ;;  %s713_s0 = inlined_call_operand.vmem [shape: bf16[8,8,32], index: 0, kind: input, shape index: {}]   ;;  %s714_s1 = inlined_call_operand.vmem [shape: bf16[8,8,32], index: 1, kind: input, shape index: {}]   ;;  %s715_s2 = inlined_call_operand.vmem [shape: bf16[8,8,32], index: 2, kind: input, shape index: {}]   ;;  %s716_s3 = inlined_call_operand.vmem [shape: bf16[8,8,32], index: 3, kind: output, shape index: {}]  }
   0x1   :  { %s661_s14 = smov 0  }
   0x2 LB: > { %s32_s15 = sadd.s32 1, %s627_s13  ;;  %p548_p0 = scmp.ge.s32.totalorder %s631_s14, 1  ;;  %s631_s14 = sphi %s661_s14, %s13_s14   ;;  %s627_s13 = sphi %s659_s13, %s718_s13   ;;  %s623_s12 = sphi %s657_s12, %s717_s12  }
   0x3   : > { %p34_p1 = scmp.ge.s32.totalorder %s32_s15, 8  ;;  %p190_p2 = scmp.lt.s32.totalorder %s631_s14, 9 }
   0x5   : > { %s720_s15 = smov (%p34_p1, %s32_s15), 0  ;;  %p191_p3 = pnand %p548_p0, %p190_p2 }
   0x6   : > { %p232_p4 = scmp.lt.s32.totalorder (!%p191_p3), %s623_s12, 7  ;;  %vm269_vm0 = vcmask (!%p191_p3), 261120   ;;  %v633_v0 = vmov (!%p191_p3), 0.0   ;;  %vm634_vm1 = vmmov (!%p191_p3), 0   ;;  %vm266_vm2 = vcmask (!%p191_p3), 7168  }
   0x7   : > { %194 = sbr.rel (%p191_p3) target bundleno = 824 (0x338), region = 32  ;;  %561 = vmatprep.subr.bf16.mxu0 (!%p191_p3), %v633_v0  ;;  %270 = vst.msk [vmem:[#allocation4] sm:$0xff] (!%p191_p3), %vm269_vm0, %v633_v0  ;;  %563 = vmatprep.mubr.msk.bf16.mxu0 (!%p191_p3), %vm634_vm1, %v633_v0  ;;  %v635_v5 = vmov (!%p191_p3), -1e+30   ;;  %v328_v6 = vlaneseq (!%p191_p3)  ;;  %vm339_vm4 = vcmask (!%p191_p3), 64512   ;;  %v636_v15 = vmov (!%p191_p3), 0  }
   0x8   : > { %567 = vmatprep.subr.bf16.mxu1 (!%p191_p3), %v633_v0  ;;  %569 = vmatprep.mubr.msk.bf16.mxu1 (!%p191_p3), %vm634_vm1, %v633_v0  ;;  %267 = vst.msk [vmem:[#allocation2] sm:$0xff] (!%p191_p3), %vm266_vm2, %v635_v5  ;;  %268 = vst.msk [vmem:[#allocation3] sm:$0xff] (!%p191_p3), %vm266_vm2, %v633_v0  ;;  %vm375_vm5 = vcmask (!%p191_p3), 1043456   ;;  %vm435_vm6 = vcmask (!%p191_p3), 257024  }
   0x9   : > { %v329_v7 = vshrl.u32 (!%p191_p3), %v328_v6, 7  ;;  %v333_v8 = vand.u32 (!%p191_p3), 127, %v328_v6  ;;  %601 = vset.pattern.permute.xlu0 (!%p191_p3), %v636_v15  ;;  %602 = vset.pattern.permute.xlu1 (!%p191_p3), %v636_v15 }
   0xb   : > { %vm336_vm3 = vcmp.gt.s32.totalorder (!%p191_p3), %v333_v8, %v329_v7 }
   0xe   : > { %s722_s12 = smov (!%p232_p4, %s623_s12), 7  ;;  %v363_v36 = vld [vmem:[#allocation4] sm:$0xff] }
   0xf   : > { %s676_s16 = sshll.u32 %s722_s12, 2  ;;  %v338_v16 = vld [vmem:[#allocation2] sm:$0xff]  ;;  %v355_v30 = vld [vmem:[#allocation3] sm:$0xff] }
  0x10   : > { %s245_s19 = scalar_lea.vmem %s714_s1, %s676_s16  ;;  %s238_s22 = scalar_lea.vmem %s713_s0, %s676_s16 }
  0x11   : > { %v280_v1 = vld [vmem:[%s245_s19] sm:$0xf]  ;;  %s252_s25 = scalar_lea.vmem %s715_s2, %s676_s16  ;;  %s259_s28 = scalar_lea.vmem %s716_s3, %s676_s16 }
  0x12   : > { %v286_v2 = vsel %vm269_vm0, %v280_v1, 0  ;;  %v278_v3 = vld [vmem:[%s238_s22] sm:$0xf] }
  0x13   : > { %562 = vmatpush3.bf16.xpose.msra.mxu0 %v286_v2  ;;  %v279_v4 = vmul.bf16 1043676725, %v278_v3  ;;  %v371_v20 = vld [vmem:[%s252_s25] sm:$0xf] }
  0x14   : > { %v377_v21 = vsel %vm375_vm5, %v371_v20, 0 }
  0x15   : > { %568 = vmatpush3.bf16.msra.mxu1 %v377_v21 }
  0x1a   : > { %564 = vmatmul.mubr.msk.bf16.vlgmr.msra.gmra.mrb[0].mxu0 %vm269_vm0, %v279_v4 }
  0xed   : > { %v322_v9 = vpop.f32.mrb[0].mxu0 }
  0xee   : > { %v337_v10 = vsel %vm336_vm3, -1e+30, %v322_v9  ;;  %v565_v11 = vpop.f32.mrb[1].mxu0 }
  0xef   : > { %v325_v12 = vpop.f32.mrb[2].mxu0  ;;  %v340_v13 = vsel %vm339_vm4, %v337_v10, -inf }
  0xf0   : > { %341 = vmax.xlane.f32.xlu0 %v340_v13  ;;  %v566_v14 = vpop.f32.mrb[3].mxu0 }
 0x17d   : > { %v342_v17 = vpop.xlane.xlu0 %341 }
 0x17e   : > { %v343_v18 = vmax.f32 %v338_v16, %v342_v17 }
 0x180   : > { %v344_v19 = vsub.f32 %v338_v16, %v343_v18  ;;  %421 = vst.msk [vmem:[#allocation2] sm:$0xff] %vm266_vm2, %v343_v18  ;;  %349 = vperm.xlu0 %601, %v343_v18  }
 0x182   : > { %v345_v28 = vmul.f32 1.442695, %v344_v19 }
 0x1ff   : > { %v350_v22 = vpop.permute.xlu0 %349 }
 0x200   : > { %v352_v23 = vsub.f32 %v337_v10, %v350_v22 }
 0x202   : > { %v353_v24 = vmul.f32 1.442695, %v352_v23 }
 0x204   : > { %603 = vpow2.f32 %v353_v24 }
 0x205   : > { %605 = vpow2.f32 %v345_v28 }
 0x20e   : > { %v604_v25 = vpop.eup %603 }
 0x20f   : > { %v357_v26 = vsel %vm339_vm4, %v604_v25, 0.0  ;;  %v370_v27 = vpack.c.bf16 %v604_v25, %v604_v25  ;;  %v606_v29 = vpop.eup %605 }
 0x210   : > { %358 = vadd.xlane.f32.xlu1 %v357_v26  ;;  %v356_v31 = vmul.f32 %v606_v29, %v355_v30 }
 0x211   : > { %570 = vmatmul.mubr.msk.bf16.vlgmr.msra.gmra.mrb[0].mxu1 %vm339_vm4, %v370_v27 }
 0x221   : > { %366 = vperm.xlu1 %602, %v606_v29  }
 0x29d   : > { %v359_v32 = vpop.xlane.xlu1 %358 }
 0x29e   : > { %v360_v33 = vadd.f32 %v359_v32, %v356_v31 }
 0x2a0   : > { %362 = vst.msk [vmem:[#allocation3] sm:$0xff] %vm266_vm2, %v360_v33 }
 0x2a1   : > { %v367_v37 = vpop.permute.xlu1 %366 }
 0x2a2   : > { %v369_v38 = vmul.f32 %v367_v37, %v363_v36 }
 0x2a7   : > { %v425_v34 = vld [vmem:[#allocation3] sm:$0xff] }
 0x2a8   : > { %607 = vrcp.f32 %v425_v34 }
 0x2b2   : > { %v608_v35 = vpop.eup %607 }
 0x2b3   : > { %430 = vperm.xlu1 %602, %v608_v35  }
 0x2e4   : > { %v413_v39 = vpop.f32.mrb[0].mxu1 }
 0x2e5   : > { %v419_v40 = vadd.f32 %v413_v39, %v369_v38  ;;  %v571_v41 = vpop.f32.mrb[1].mxu1 }
 0x2e6   : > { %v416_v42 = vpop.f32.mrb[2].mxu1 }
 0x2e7   : > { %420 = vst.msk [vmem:[#allocation4] sm:$0xff] %vm269_vm0, %v419_v40  ;;  %v572_v43 = vpop.f32.mrb[3].mxu1 }
 0x2ee   : > { %v427_v44 = vld [vmem:[#allocation4] sm:$0xff] }
 0x332   : > { %v431_v45 = vpop.permute.xlu1 %430 }
 0x333   : > { %v433_v46 = vmul.f32 %v431_v45, %v427_v44 }
 0x335   : > { %v434_v47 = vpack.c.bf16 %v433_v46, %v433_v46 }
 0x337   : > { %436 = vst.msk [vmem:[%s259_s28] sm:$0xf] %vm435_vm6, %v434_v47 }
 0x338 PF: > { %s13_s14 = sadd.s32 1, %s631_s14   ;;  %s717_s12 = smov %s627_s13 }
 0x339   : > { %p10_p5 = scmp.ge.s32.totalorder %s13_s14, 10   ;;  %s718_s13 = smov %s720_s15 }
 0x33b   :  { %12 = sbr.rel (!%p10_p5) target bundleno = 2 (0x2), region = 80 }

// kernel: _lambda_.13
= control target key start
LH: loop header
LB: loop body
LE: loop exit
PB: predicated region body
PF: predicated region fallthrough
CT: control target
= control target key end

     0   :  { %v217_v0 = vmov 0.0   ;;  %vm218_vm0 = vmmov 0   ;;  %s286_s1 = inlined_call_operand.vmem [shape: bf16[128,128], index: 1, kind: input, shape index: {}]   ;;  %s287_s0 = inlined_call_operand.vmem [shape: bf16[16,128], index: 0, kind: input, shape index: {}]   ;;  %s288_s2 = inlined_call_operand.vmem [shape: f32[1,128], index: 2, kind: input, shape index: {}]   ;;  %s289_s3 = inlined_call_operand.vmem [shape: f32[16,128], index: 3, kind: input, shape index: {}]   ;;  %s290_s4 = inlined_call_operand.vmem [shape: f32[16,128], index: 4, kind: output, shape index: {}]  }
   0x1   :  { %186 = vmatprep.subr.bf16.mxu0 %v217_v0  ;;  %v208_v1 = vld [vmem:[%s286_s1] sm:$0xff]   ;;  %202 = vmatprep.mubr.msk.bf16.mxu0 %vm218_vm0, %v217_v0  ;;  %v209_v2 = vld [vmem:[%s286_s1 + $0x8] sm:$0xff]   ;;  %v210_v3 = vld [vmem:[%s286_s1 + $0x10] sm:$0xff]  }
   0x2   :  { %187 = vmatpush3.bf16.msra.mxu0 %v208_v1  ;;  %v211_v4 = vld [vmem:[%s286_s1 + $0x18] sm:$0xff]   ;;  %v212_v5 = vld [vmem:[%s286_s1 + $0x20] sm:$0xff]   ;;  %v213_v6 = vld [vmem:[%s286_s1 + $0x28] sm:$0xff]  }
   0x3   :  { %188 = vmatprep.subr.bf16.mxu0 %v217_v0  ;;  %v214_v7 = vld [vmem:[%s286_s1 + $0x30] sm:$0xff]   ;;  %v215_v8 = vld [vmem:[%s286_s1 + $0x38] sm:$0xff]   ;;  %v216_v9 = vld [vmem:[%s287_s0] sm:$0xff]  }
   0x4   :  { %v176_v10 = vld [vmem:[%s288_s2] ss:$0 sm:$0xff]  ;;  %v158_v16 = vld [vmem:[%s289_s3 + $0x8] sm:$0xff] }
   0x5   :  { %v157_v12 = vld [vmem:[%s289_s3] sm:$0xff] }
   0x6   :  { %189 = vmatpush3.bf16.msra.mxu0 %v209_v2 }
   0x7   :  { %190 = vmatprep.subr.bf16.mxu0 %v217_v0 }
   0xa   :  { %191 = vmatpush3.bf16.msra.mxu0 %v210_v3 }
   0xb   :  { %192 = vmatprep.subr.bf16.mxu0 %v217_v0 }
   0xe   :  { %193 = vmatpush3.bf16.msra.mxu0 %v211_v4 }
   0xf   :  { %194 = vmatprep.subr.bf16.mxu0 %v217_v0 }
  0x12   :  { %195 = vmatpush3.bf16.msra.mxu0 %v212_v5 }
  0x13   :  { %196 = vmatprep.subr.bf16.mxu0 %v217_v0 }
  0x16   :  { %197 = vmatpush3.bf16.msra.mxu0 %v213_v6 }
  0x17   :  { %198 = vmatprep.subr.bf16.mxu0 %v217_v0 }
  0x1a   :  { %199 = vmatpush3.bf16.msra.mxu0 %v214_v7 }
  0x1b   :  { %200 = vmatprep.subr.bf16.mxu0 %v217_v0 }
  0x1e   :  { %201 = vmatpush3.bf16.msra.mxu0 %v215_v8 }
  0x21   :  { %203 = vmatmul.mubr.bf16.vlgmr.msra.gmra.mrb[0].mxu0 %v216_v9 }
  0xf4   :  { %v132_v11 = vpop.f32.mrb[0].mxu0 }
  0xf5   :  { %v155_v13 = vadd.f32 %v176_v10, %v132_v11  ;;  %v204_v14 = vpop.f32.mrb[1].mxu0 }
  0xf6   :  { %v135_v15 = vpop.f32.mrb[2].mxu0 }
  0xf7   :  { %v159_v17 = vadd.f32 %v157_v12, %v155_v13  ;;  %v156_v18 = vadd.f32 %v176_v10, %v135_v15  ;;  %v205_v19 = vpop.f32.mrb[3].mxu0 }
  0xf9   :  { %161 = vst [vmem:[%s290_s4] sm:$0xff] %v159_v17  ;;  %v160_v20 = vadd.f32 %v158_v16, %v156_v18 }
  0xfb   :  { %162 = vst [vmem:[%s290_s4 + $0x8] sm:$0xff] %v160_v20 }

// kernel: _lambda_.11
= control target key start
LH: loop header
LB: loop body
LE: loop exit
PB: predicated region body
PF: predicated region fallthrough
CT: control target
= control target key end

     0   :  { %v442_v3 = vmov 0.0   ;;  %v443_v30 = vmov 0   ;;  %vm444_vm0 = vmmov 0   ;;  %s585_s0 = inlined_call_operand.vmem [shape: f32[16,128], index: 0, kind: input, shape index: {}]   ;;  %s586_s3 = inlined_call_operand.vmem [shape: bf16[128,384], index: 3, kind: input, shape index: {}]   ;;  %s587_s1 = inlined_call_operand.vmem [shape: f32[1,128], index: 1, kind: input, shape index: {}]   ;;  %s588_s2 = inlined_call_operand.vmem [shape: f32[1,128], index: 2, kind: input, shape index: {}]   ;;  %s589_s4 = inlined_call_operand.vmem [shape: bf16[16,384], index: 4, kind: output, shape index: {}]  }
   0x1   :  { %v22_v0 = vld [vmem:[%s585_s0] sm:$0xff]  ;;  %v23_v1 = vld [vmem:[%s585_s0 + $0x8] sm:$0xff]  ;;  %383 = vmatprep.subr.bf16.mxu1 %v442_v3  ;;  %v416_v18 = vld [vmem:[%s586_s3 + $0x30] ss:$12 sps:$4 sm:$0xff]   ;;  %260 = vmatprep.mubr.bf16.mxu0 %v443_v30 }
   0x2   :  { %24 = vadd.xlane.f32.xlu0 %v22_v0  ;;  %v406_v2 = vld [vmem:[%s586_s3 + $0x4] ss:$12 sps:$4 sm:$0xff]   ;;  %v408_v4 = vld [vmem:[%s586_s3] ss:$12 sps:$4 sm:$0xff]   ;;  %v409_v5 = vld [vmem:[%s586_s3 + $0x8] ss:$12 sps:$4 sm:$0xff]   ;;  %399 = vmatprep.mubr.msk.bf16.mxu1 %vm444_vm0, %v442_v3 }
   0x3   :  { %228 = vmatprep.subr.bf16.mxu0 %v406_v2  ;;  %v410_v6 = vld [vmem:[%s586_s3 + $0x1c] ss:$12 sps:$4 sm:$0xff]   ;;  %384 = vmatpush3.bf16.msra.mxu1 %v409_v5  ;;  %v412_v15 = vld [vmem:[%s586_s3 + $0x18] ss:$12 sps:$4 sm:$0xff]   ;;  %v413_v16 = vld [vmem:[%s586_s3 + $0x20] ss:$12 sps:$4 sm:$0xff]  }
   0x4   :  { %229 = vmatpush1.bf16.msra.mxu0 %v408_v4  ;;  %385 = vmatprep.subr.bf16.mxu1 %v442_v3  ;;  %v414_v17 = vld [vmem:[%s586_s3 + $0x34] ss:$12 sps:$4 sm:$0xff]   ;;  %v417_v19 = vld [vmem:[%s586_s3 + $0x38] ss:$12 sps:$4 sm:$0xff]   ;;  %v421_v22 = vld [vmem:[%s586_s3 + $0x50] ss:$12 sps:$4 sm:$0xff]  }
   0x5   :  { %230 = vmatprep.subr.bf16.mxu0 %v410_v6  ;;  %v418_v20 = vld [vmem:[%s586_s3 + $0x4c] ss:$12 sps:$4 sm:$0xff]   ;;  %v420_v21 = vld [vmem:[%s586_s3 + $0x48] ss:$12 sps:$4 sm:$0xff]   ;;  %v422_v23 = vld [vmem:[%s586_s3 + $0x64] ss:$12 sps:$4 sm:$0xff]  }
   0x6   :  { %26 = vadd.xlane.f32.xlu0 %v23_v1  ;;  %v424_v24 = vld [vmem:[%s586_s3 + $0x60] ss:$12 sps:$4 sm:$0xff]   ;;  %v425_v25 = vld [vmem:[%s586_s3 + $0x68] ss:$12 sps:$4 sm:$0xff]   ;;  %v428_v27 = vld [vmem:[%s586_s3 + $0x78] ss:$12 sps:$4 sm:$0xff]  }
   0x7   :  { %386 = vmatpush3.bf16.msra.mxu1 %v413_v16  ;;  %v426_v26 = vld [vmem:[%s586_s3 + $0x7c] ss:$12 sps:$4 sm:$0xff]   ;;  %v429_v28 = vld [vmem:[%s586_s3 + $0x80] ss:$12 sps:$4 sm:$0xff]   ;;  %v433_v32 = vld [vmem:[%s586_s3 + $0x98] ss:$12 sps:$4 sm:$0xff]  }
   0x8   :  { %231 = vmatpush1.bf16.msra.mxu0 %v412_v15  ;;  %387 = vmatprep.subr.bf16.mxu1 %v442_v3  ;;  %v430_v29 = vld [vmem:[%s586_s3 + $0x94] ss:$12 sps:$4 sm:$0xff]   ;;  %v432_v31 = vld [vmem:[%s586_s3 + $0x90] ss:$12 sps:$4 sm:$0xff]   ;;  %v434_v33 = vld [vmem:[%s586_s3 + $0xac] ss:$12 sps:$4 sm:$0xff]  }
   0x9   :  { %232 = vmatprep.subr.bf16.mxu0 %v414_v17  ;;  %v436_v34 = vld [vmem:[%s586_s3 + $0xa8] ss:$12 sps:$4 sm:$0xff]   ;;  %v437_v35 = vld [vmem:[%s586_s3 + $0xb0] ss:$12 sps:$4 sm:$0xff]   ;;  %v340_v44 = vld [vmem:[%s587_s1] ss:$0 sm:$0xff] }
   0xa   :  { %v341_v48 = vld [vmem:[%s588_s2] ss:$0 sm:$0xff] }
   0xb   :  { %388 = vmatpush3.bf16.msra.mxu1 %v417_v19 }
   0xc   :  { %233 = vmatpush1.bf16.msra.mxu0 %v416_v18  ;;  %389 = vmatprep.subr.bf16.mxu1 %v442_v3 }
   0xd   :  { %234 = vmatprep.subr.bf16.mxu0 %v418_v20 }
   0xf   :  { %390 = vmatpush3.bf16.msra.mxu1 %v421_v22 }
  0x10   :  { %235 = vmatpush1.bf16.msra.mxu0 %v420_v21  ;;  %391 = vmatprep.subr.bf16.mxu1 %v442_v3 }
  0x11   :  { %236 = vmatprep.subr.bf16.mxu0 %v422_v23 }
  0x13   :  { %392 = vmatpush3.bf16.msra.mxu1 %v425_v25 }
  0x14   :  { %237 = vmatpush1.bf16.msra.mxu0 %v424_v24  ;;  %393 = vmatprep.subr.bf16.mxu1 %v442_v3 }
  0x15   :  { %238 = vmatprep.subr.bf16.mxu0 %v426_v26 }
  0x17   :  { %394 = vmatpush3.bf16.msra.mxu1 %v429_v28 }
  0x18   :  { %239 = vmatpush1.bf16.msra.mxu0 %v428_v27  ;;  %395 = vmatprep.subr.bf16.mxu1 %v442_v3 }
  0x19   :  { %240 = vmatprep.subr.bf16.mxu0 %v430_v29 }
  0x1b   :  { %396 = vmatpush3.bf16.msra.mxu1 %v433_v32 }
  0x1c   :  { %241 = vmatpush1.bf16.msra.mxu0 %v432_v31  ;;  %397 = vmatprep.subr.bf16.mxu1 %v442_v3 }
  0x1d   :  { %242 = vmatprep.subr.bf16.mxu0 %v434_v33 }
  0x1f   :  { %398 = vmatpush3.bf16.msra.mxu1 %v437_v35 }
  0x20   :  { %243 = vmatpush1.bf16.msra.mxu0 %v436_v34 }
  0x8f   :  { %v25_v7 = vpop.xlane.xlu0 %24 }
  0x90   :  { %v29_v8 = vmul.f32 0.0078125, %v25_v7 }
  0x92   :  { %v490_v9 = vsub.f32 %v22_v0, %v29_v8 }
  0x93   :  { %v27_v10 = vpop.xlane.xlu0 %26 }
  0x94   :  { %v30_v11 = vmul.f32 0.0078125, %v27_v10  ;;  %v33_v12 = vmul.f32 %v490_v9, %v490_v9 }
  0x96   :  { %v494_v13 = vsub.f32 %v23_v1, %v30_v11  ;;  %35 = vadd.xlane.f32.xlu1 %v33_v12 }
  0x98   :  { %v34_v14 = vmul.f32 %v494_v13, %v494_v13 }
  0x9a   :  { %37 = vadd.xlane.f32.xlu1 %v34_v14 }
 0x123   :  { %v36_v36 = vpop.xlane.xlu1 %35 }
 0x124   :  { %v39_v37 = vmul.f32 0.0078125, %v36_v36 }
 0x126   :  { %v41_v38 = vadd.f32 1e-05, %v39_v37 }
 0x127   :  { %v38_v39 = vpop.xlane.xlu1 %37 }
 0x128   :  { %438 = vrsqrt.f32 %v41_v38  ;;  %v40_v40 = vmul.f32 0.0078125, %v38_v39 }
 0x12a   :  { %v42_v41 = vadd.f32 1e-05, %v40_v40 }
 0x12c   :  { %440 = vrsqrt.f32 %v42_v41 }
 0x132   :  { %v439_v42 = vpop.eup %438 }
 0x133   :  { %v45_v43 = vmul.f32 %v439_v42, %v490_v9 }
 0x135   :  { %v54_v47 = vmul.f32 %v340_v44, %v45_v43 }
 0x136   :  { %v441_v45 = vpop.eup %440 }
 0x137   :  { %v46_v46 = vmul.f32 %v441_v45, %v494_v13  ;;  %v63_v50 = vadd.f32 %v341_v48, %v54_v47 }
 0x139   :  { %v55_v49 = vmul.f32 %v340_v44, %v46_v46 }
 0x13b   :  { %v64_v51 = vadd.f32 %v341_v48, %v55_v49 }
 0x13d   :  { %v65_v52 = vpack.c.bf16 %v64_v51, %v63_v50 }
 0x13f   :  { %261 = vmatmul.mubr.bf16.vlgmr.msra.gmra.mrb[0].mxu0 %v65_v52  ;;  %400 = vmatmul.mubr.bf16.vlgmr.msra.gmra.mrb[0].mxu1 %v65_v52 }
 0x212   :  { %v262_v53 = vpop.f32.mrb[0].mxu0  ;;  %v305_v54 = vpop.f32.mrb[0].mxu1 }
 0x213   :  { %v371_v55 = vpack.c.bf16 %v305_v54, %v305_v54  ;;  %v264_v56 = vpop.f32.mrb[1].mxu0  ;;  %v401_v57 = vpop.f32.mrb[1].mxu1 }
 0x214   :  { %v370_v58 = vpack.c.bf16 %v264_v56, %v262_v53  ;;  %v266_v59 = vpop.f32.mrb[2].mxu0  ;;  %v308_v60 = vpop.f32.mrb[2].mxu1 }
 0x215   :  { %333 = vst [vmem:[%s589_s4 + $0x8] sm:$0xf] %v371_v55  ;;  %v373_v61 = vpack.c.bf16 %v308_v60, %v308_v60  ;;  %v268_v62 = vpop.f32.mrb[3].mxu0  ;;  %v402_v63 = vpop.f32.mrb[3].mxu1 }
 0x216   :  { %332 = vst [vmem:[%s589_s4] sm:$0xff] %v370_v58  ;;  %v372_v0 = vpack.c.bf16 %v268_v62, %v266_v59 }
 0x217   :  { %335 = vst [vmem:[%s589_s4 + $0x14] sm:$0xf] %v373_v61 }
 0x218   :  { %334 = vst [vmem:[%s589_s4 + $0xc] sm:$0xff] %v372_v0 }

// kernel: _lambda_.14
= control target key start
LH: loop header
LB: loop body
LE: loop exit
PB: predicated region body
PF: predicated region fallthrough
CT: control target
= control target key end

     0   :  { %v586_v36 = vmov 0   ;;  %v105_v60 = vlaneseq  ;;  %s806_s0 = inlined_call_operand.vmem [shape: f32[16,128], index: 0, kind: input, shape index: {}]   ;;  %s807_s3 = inlined_call_operand.vmem [shape: bf16[128,512], index: 3, kind: input, shape index: {}]   ;;  %s808_s1 = inlined_call_operand.vmem [shape: f32[1,128], index: 1, kind: input, shape index: {}]   ;;  %s809_s2 = inlined_call_operand.vmem [shape: f32[1,128], index: 2, kind: input, shape index: {}]   ;;  %s810_s4 = inlined_call_operand.vmem [shape: f32[1,512], index: 4, kind: input, shape index: {}]   ;;  %s811_s5 = inlined_call_operand.vmem [shape: bf16[16,512], index: 5, kind: output, shape index: {}]  }
   0x1   :  { %v25_v0 = vld [vmem:[%s806_s0] sm:$0xff]  ;;  %v26_v1 = vld [vmem:[%s806_s0 + $0x8] sm:$0xff]  ;;  %317 = vmatprep.mubr.bf16.mxu0 %v586_v36  ;;  %360 = vmatprep.mubr.bf16.mxu1 %v586_v36 }
   0x2   :  { %27 = vadd.xlane.f32.xlu0 %v25_v0  ;;  %v518_v2 = vld [vmem:[%s807_s3 + $0x4] ss:$16 sps:$4 sm:$0xff]   ;;  %v520_v3 = vld [vmem:[%s807_s3 + $0xc] ss:$16 sps:$4 sm:$0xff]   ;;  %v522_v4 = vld [vmem:[%s807_s3] ss:$16 sps:$4 sm:$0xff]  }
   0x3   :  { %285 = vmatprep.subr.bf16.mxu0 %v518_v2  ;;  %v523_v5 = vld [vmem:[%s807_s3 + $0x8] ss:$16 sps:$4 sm:$0xff]   ;;  %328 = vmatprep.subr.bf16.mxu1 %v520_v3  ;;  %v524_v6 = vld [vmem:[%s807_s3 + $0x24] ss:$16 sps:$4 sm:$0xff]   ;;  %v526_v7 = vld [vmem:[%s807_s3 + $0x2c] ss:$16 sps:$4 sm:$0xff]  }
   0x4   :  { %286 = vmatpush1.bf16.msra.mxu0 %v522_v4  ;;  %329 = vmatpush1.bf16.msra.mxu1 %v523_v5  ;;  %v528_v16 = vld [vmem:[%s807_s3 + $0x20] ss:$16 sps:$4 sm:$0xff]   ;;  %v529_v17 = vld [vmem:[%s807_s3 + $0x28] ss:$16 sps:$4 sm:$0xff]   ;;  %v530_v18 = vld [vmem:[%s807_s3 + $0x44] ss:$16 sps:$4 sm:$0xff]  }
   0x5   :  { %287 = vmatprep.subr.bf16.mxu0 %v524_v6  ;;  %330 = vmatprep.subr.bf16.mxu1 %v526_v7  ;;  %v532_v19 = vld [vmem:[%s807_s3 + $0x4c] ss:$16 sps:$4 sm:$0xff]   ;;  %v534_v20 = vld [vmem:[%s807_s3 + $0x40] ss:$16 sps:$4 sm:$0xff]   ;;  %v535_v21 = vld [vmem:[%s807_s3 + $0x48] ss:$16 sps:$4 sm:$0xff]  }
   0x6   :  { %29 = vadd.xlane.f32.xlu0 %v26_v1  ;;  %v536_v22 = vld [vmem:[%s807_s3 + $0x64] ss:$16 sps:$4 sm:$0xff]   ;;  %v538_v23 = vld [vmem:[%s807_s3 + $0x6c] ss:$16 sps:$4 sm:$0xff]   ;;  %v540_v24 = vld [vmem:[%s807_s3 + $0x60] ss:$16 sps:$4 sm:$0xff]  }
   0x7   :  { %v541_v25 = vld [vmem:[%s807_s3 + $0x68] ss:$16 sps:$4 sm:$0xff]   ;;  %v542_v26 = vld [vmem:[%s807_s3 + $0x84] ss:$16 sps:$4 sm:$0xff]   ;;  %v544_v27 = vld [vmem:[%s807_s3 + $0x8c] ss:$16 sps:$4 sm:$0xff]  }
   0x8   :  { %288 = vmatpush1.bf16.msra.mxu0 %v528_v16  ;;  %331 = vmatpush1.bf16.msra.mxu1 %v529_v17  ;;  %v546_v28 = vld [vmem:[%s807_s3 + $0x80] ss:$16 sps:$4 sm:$0xff]   ;;  %v547_v29 = vld [vmem:[%s807_s3 + $0x88] ss:$16 sps:$4 sm:$0xff]   ;;  %v548_v30 = vld [vmem:[%s807_s3 + $0xa4] ss:$16 sps:$4 sm:$0xff]  }
   0x9   :  { %289 = vmatprep.subr.bf16.mxu0 %v530_v18  ;;  %332 = vmatprep.subr.bf16.mxu1 %v532_v19  ;;  %v550_v31 = vld [vmem:[%s807_s3 + $0xac] ss:$16 sps:$4 sm:$0xff]   ;;  %v552_v32 = vld [vmem:[%s807_s3 + $0xa0] ss:$16 sps:$4 sm:$0xff]   ;;  %v553_v33 = vld [vmem:[%s807_s3 + $0xa8] ss:$16 sps:$4 sm:$0xff]  }
   0xa   :  { %v554_v34 = vld [vmem:[%s807_s3 + $0xc4] ss:$16 sps:$4 sm:$0xff]   ;;  %v556_v35 = vld [vmem:[%s807_s3 + $0xcc] ss:$16 sps:$4 sm:$0xff]   ;;  %v558_v37 = vld [vmem:[%s807_s3 + $0xc0] ss:$16 sps:$4 sm:$0xff]  }
   0xb   :  { %v559_v38 = vld [vmem:[%s807_s3 + $0xc8] ss:$16 sps:$4 sm:$0xff]   ;;  %v560_v39 = vld [vmem:[%s807_s3 + $0xe4] ss:$16 sps:$4 sm:$0xff]   ;;  %v562_v40 = vld [vmem:[%s807_s3 + $0xec] ss:$16 sps:$4 sm:$0xff]  }
   0xc   :  { %290 = vmatpush1.bf16.msra.mxu0 %v534_v20  ;;  %333 = vmatpush1.bf16.msra.mxu1 %v535_v21  ;;  %v564_v41 = vld [vmem:[%s807_s3 + $0xe0] ss:$16 sps:$4 sm:$0xff]   ;;  %v565_v42 = vld [vmem:[%s807_s3 + $0xe8] ss:$16 sps:$4 sm:$0xff]   ;;  %v106_v61 = vshrl.u32 %v105_v60, 7 }
   0xd   :  { %291 = vmatprep.subr.bf16.mxu0 %v536_v22  ;;  %334 = vmatprep.subr.bf16.mxu1 %v538_v23  ;;  %v475_v51 = vld [vmem:[%s808_s1] ss:$0 sm:$0xff] }
   0xe   :  { %v476_v55 = vld [vmem:[%s809_s2] ss:$0 sm:$0xff]  ;;  %v107_v62 = vsub.s32 0, %v106_v61  ;;  %v115_v63 = vsub.s32 2, %v106_v61  ;;  %v119_v2 = vsub.s32 3, %v106_v61 }
  0x10   :  { %292 = vmatpush1.bf16.msra.mxu0 %v540_v24  ;;  %335 = vmatpush1.bf16.msra.mxu1 %v541_v25 }
  0x11   :  { %293 = vmatprep.subr.bf16.mxu0 %v542_v26  ;;  %336 = vmatprep.subr.bf16.mxu1 %v544_v27 }
  0x14   :  { %294 = vmatpush1.bf16.msra.mxu0 %v546_v28  ;;  %337 = vmatpush1.bf16.msra.mxu1 %v547_v29 }
  0x15   :  { %295 = vmatprep.subr.bf16.mxu0 %v548_v30  ;;  %338 = vmatprep.subr.bf16.mxu1 %v550_v31 }
  0x18   :  { %296 = vmatpush1.bf16.msra.mxu0 %v552_v32  ;;  %339 = vmatpush1.bf16.msra.mxu1 %v553_v33 }
  0x19   :  { %297 = vmatprep.subr.bf16.mxu0 %v554_v34  ;;  %340 = vmatprep.subr.bf16.mxu1 %v556_v35 }
  0x1c   :  { %298 = vmatpush1.bf16.msra.mxu0 %v558_v37  ;;  %341 = vmatpush1.bf16.msra.mxu1 %v559_v38 }
  0x1d   :  { %299 = vmatprep.subr.bf16.mxu0 %v560_v39  ;;  %342 = vmatprep.subr.bf16.mxu1 %v562_v40 }
  0x20   :  { %300 = vmatpush1.bf16.msra.mxu0 %v564_v41  ;;  %343 = vmatpush1.bf16.msra.mxu1 %v565_v42 }
  0x8f   :  { %v28_v8 = vpop.xlane.xlu0 %27 }
  0x90   :  { %v32_v9 = vmul.f32 0.0078125, %v28_v8 }
  0x92   :  { %v641_v10 = vsub.f32 %v25_v0, %v32_v9  ;;  %v103_v0 = vld [vmem:[%s810_s4] sm:$0xf] }
  0x93   :  { %v30_v11 = vpop.xlane.xlu0 %29  ;;  %v108_v3 = vrot.slane %v103_v0, %v107_v62  ;;  %v116_v4 = vrot.slane %v103_v0, %v115_v63  ;;  %v120_v6 = vrot.slane %v103_v0, %v119_v2 }
  0x94   :  { %v33_v12 = vmul.f32 0.0078125, %v30_v11  ;;  %v36_v13 = vmul.f32 %v641_v10, %v641_v10 }
  0x96   :  { %v645_v14 = vsub.f32 %v26_v1, %v33_v12  ;;  %38 = vadd.xlane.f32.xlu1 %v36_v13  ;;  %v111_v1 = vsub.s32 1, %v106_v61 }
  0x98   :  { %v37_v15 = vmul.f32 %v645_v14, %v645_v14  ;;  %v112_v5 = vrot.slane %v103_v0, %v111_v1 }
  0x9a   :  { %40 = vadd.xlane.f32.xlu1 %v37_v15 }
 0x123   :  { %v39_v43 = vpop.xlane.xlu1 %38 }
 0x124   :  { %v42_v44 = vmul.f32 0.0078125, %v39_v43 }
 0x126   :  { %v44_v45 = vadd.f32 1e-05, %v42_v44 }
 0x127   :  { %v41_v46 = vpop.xlane.xlu1 %40 }
 0x128   :  { %566 = vrsqrt.f32 %v44_v45  ;;  %v43_v47 = vmul.f32 0.0078125, %v41_v46 }
 0x12a   :  { %v45_v48 = vadd.f32 1e-05, %v43_v47 }
 0x12c   :  { %568 = vrsqrt.f32 %v45_v48 }
 0x132   :  { %v567_v49 = vpop.eup %566 }
 0x133   :  { %v48_v50 = vmul.f32 %v567_v49, %v641_v10 }
 0x135   :  { %v57_v54 = vmul.f32 %v475_v51, %v48_v50 }
 0x136   :  { %v569_v52 = vpop.eup %568 }
 0x137   :  { %v49_v53 = vmul.f32 %v569_v52, %v645_v14  ;;  %v66_v57 = vadd.f32 %v476_v55, %v57_v54 }
 0x139   :  { %v58_v56 = vmul.f32 %v475_v51, %v49_v53 }
 0x13b   :  { %v67_v58 = vadd.f32 %v476_v55, %v58_v56 }
 0x13d   :  { %v68_v59 = vpack.c.bf16 %v67_v58, %v66_v57 }
 0x13f   :  { %318 = vmatmul.mubr.bf16.vlgmr.msra.gmra.mrb[0].mxu0 %v68_v59  ;;  %361 = vmatmul.mubr.bf16.vlgmr.msra.gmra.mrb[0].mxu1 %v68_v59 }
 0x212   :  { %v319_v7 = vpop.f32.mrb[0].mxu0  ;;  %v362_v8 = vpop.f32.mrb[0].mxu1 }
 0x213   :  { %v738_v9 = vadd.f32 %v319_v7, %v108_v3  ;;  %v740_v10 = vadd.f32 %v362_v8, %v116_v4  ;;  %v321_v11 = vpop.f32.mrb[1].mxu0  ;;  %v364_v12 = vpop.f32.mrb[1].mxu1 }
 0x214   :  { %v742_v13 = vadd.f32 %v321_v11, %v112_v5  ;;  %v744_v14 = vadd.f32 %v364_v12, %v120_v6  ;;  %v323_v15 = vpop.f32.mrb[2].mxu0  ;;  %v366_v16 = vpop.f32.mrb[2].mxu1 }
 0x215   :  { %v379_v17 = vmul.f32 0.044715, %v738_v9  ;;  %v381_v18 = vmul.f32 0.044715, %v740_v10  ;;  %v752_v23 = vadd.f32 %v323_v15, %v108_v3  ;;  %v754_v24 = vadd.f32 %v366_v16, %v116_v4  ;;  %v325_v25 = vpop.f32.mrb[3].mxu0  ;;  %v368_v26 = vpop.f32.mrb[3].mxu1 }
 0x216   :  { %v380_v19 = vmul.f32 0.044715, %v742_v13  ;;  %v382_v20 = vmul.f32 0.044715, %v744_v14  ;;  %v758_v29 = vadd.f32 %v325_v25, %v112_v5  ;;  %v769_v39 = vadd.f32 %v368_v26, %v120_v6 }
 0x217   :  { %v387_v21 = vmul.f32 %v379_v17, %v738_v9  ;;  %v389_v22 = vmul.f32 %v381_v18, %v740_v10  ;;  %v383_v32 = vmul.f32 0.044715, %v752_v23  ;;  %v385_v35 = vmul.f32 0.044715, %v754_v24 }
 0x218   :  { %v388_v27 = vmul.f32 %v380_v19, %v742_v13  ;;  %v390_v28 = vmul.f32 %v382_v20, %v744_v14  ;;  %v384_v43 = vmul.f32 0.044715, %v758_v29  ;;  %v386_v52 = vmul.f32 0.044715, %v769_v39 }
 0x219   :  { %v395_v30 = vmul.f32 %v387_v21, %v738_v9  ;;  %v397_v31 = vmul.f32 %v389_v22, %v740_v10  ;;  %v391_v38 = vmul.f32 %v383_v32, %v752_v23  ;;  %v393_v42 = vmul.f32 %v385_v35, %v754_v24 }
 0x21a   :  { %v396_v33 = vmul.f32 %v388_v27, %v742_v13  ;;  %v398_v34 = vmul.f32 %v390_v28, %v744_v14  ;;  %v392_v50 = vmul.f32 %v384_v43, %v758_v29  ;;  %v394_v56 = vmul.f32 %v386_v52, %v769_v39 }
 0x21b   :  { %v403_v36 = vadd.f32 %v395_v30, %v738_v9  ;;  %v405_v37 = vadd.f32 %v397_v31, %v740_v10  ;;  %v399_v46 = vmul.f32 %v391_v38, %v752_v23  ;;  %v401_v49 = vmul.f32 %v393_v42, %v754_v24 }
 0x21c   :  { %v404_v40 = vadd.f32 %v396_v33, %v742_v13  ;;  %v406_v41 = vadd.f32 %v398_v34, %v744_v14  ;;  %v400_v54 = vmul.f32 %v392_v50, %v758_v29  ;;  %v402_v59 = vmul.f32 %v394_v56, %v769_v39 }
 0x21d   :  { %v411_v44 = vmul.f32 0.7978846, %v403_v36  ;;  %v413_v45 = vmul.f32 0.7978846, %v405_v37  ;;  %v407_v51 = vadd.f32 %v399_v46, %v752_v23  ;;  %v409_v53 = vadd.f32 %v401_v49, %v754_v24 }
 0x21e   :  { %v412_v47 = vmul.f32 0.7978846, %v404_v40  ;;  %v414_v48 = vmul.f32 0.7978846, %v406_v41  ;;  %v408_v58 = vadd.f32 %v400_v54, %v758_v29  ;;  %v410_v61 = vadd.f32 %v402_v59, %v769_v39 }
 0x21f   :  { %570 = vtanh.f32 %v411_v44  ;;  %v415_v55 = vmul.f32 0.7978846, %v407_v51  ;;  %v417_v57 = vmul.f32 0.7978846, %v409_v53  ;;  %v371_v1 = vmul.f32 0.5, %v738_v9 }
 0x220   :  { %572 = vtanh.f32 %v413_v45  ;;  %v416_v60 = vmul.f32 0.7978846, %v408_v58  ;;  %v418_v62 = vmul.f32 0.7978846, %v410_v61  ;;  %v373_v4 = vmul.f32 0.5, %v740_v10 }
 0x221   :  { %574 = vtanh.f32 %v412_v47  ;;  %v372_v8 = vmul.f32 0.5, %v742_v13  ;;  %v374_v16 = vmul.f32 0.5, %v744_v14  ;;  %v375_v9 = vmul.f32 0.5, %v752_v23 }
 0x222   :  { %576 = vtanh.f32 %v414_v48  ;;  %v376_v28 = vmul.f32 0.5, %v758_v29  ;;  %v377_v14 = vmul.f32 0.5, %v754_v24  ;;  %v378_v32 = vmul.f32 0.5, %v769_v39 }
 0x223   :  { %578 = vtanh.f32 %v415_v55 }
 0x224   :  { %580 = vtanh.f32 %v417_v57 }
 0x225   :  { %582 = vtanh.f32 %v416_v60 }
 0x226   :  { %584 = vtanh.f32 %v418_v62 }
 0x229   :  { %v571_v63 = vpop.eup %570 }
 0x22a   :  { %v573_v0 = vpop.eup %572  ;;  %v427_v2 = vadd.f32 1.0, %v571_v63 }
 0x22b   :  { %v575_v3 = vpop.eup %574  ;;  %v429_v5 = vadd.f32 1.0, %v573_v0 }
 0x22c   :  { %v577_v6 = vpop.eup %576  ;;  %v435_v7 = vmul.f32 %v427_v2, %v371_v1  ;;  %v428_v11 = vadd.f32 1.0, %v575_v3 }
 0x22d   :  { %v579_v12 = vpop.eup %578  ;;  %v437_v15 = vmul.f32 %v429_v5, %v373_v4  ;;  %v430_v17 = vadd.f32 1.0, %v577_v6 }
 0x22e   :  { %v581_v18 = vpop.eup %580  ;;  %v436_v19 = vmul.f32 %v428_v11, %v372_v8  ;;  %v431_v20 = vadd.f32 1.0, %v579_v12 }
 0x22f   :  { %v438_v21 = vmul.f32 %v430_v17, %v374_v16  ;;  %v583_v22 = vpop.eup %582  ;;  %v433_v10 = vadd.f32 1.0, %v581_v18 }
 0x230   :  { %v513_v25 = vpack.c.bf16 %v436_v19, %v435_v7  ;;  %v439_v27 = vmul.f32 %v431_v20, %v375_v9  ;;  %v432_v13 = vadd.f32 1.0, %v583_v22  ;;  %v585_v30 = vpop.eup %584 }
 0x231   :  { %v514_v26 = vpack.c.bf16 %v438_v21, %v437_v15  ;;  %v441_v31 = vmul.f32 %v433_v10, %v377_v14  ;;  %v434_v33 = vadd.f32 1.0, %v585_v30 }
 0x232   :  { %467 = vst [vmem:[%s811_s5] sm:$0xff] %v513_v25  ;;  %v440_v23 = vmul.f32 %v432_v13, %v376_v28 }
 0x233   :  { %468 = vst [vmem:[%s811_s5 + $0x8] sm:$0xff] %v514_v26  ;;  %v442_v35 = vmul.f32 %v434_v33, %v378_v32 }
 0x234   :  { %v515_v34 = vpack.c.bf16 %v440_v23, %v439_v27 }
 0x235   :  { %v516_v29 = vpack.c.bf16 %v442_v35, %v441_v31 }
 0x236   :  { %469 = vst [vmem:[%s811_s5 + $0x10] sm:$0xff] %v515_v34 }
 0x237   :  { %470 = vst [vmem:[%s811_s5 + $0x18] sm:$0xff] %v516_v29 }

// kernel: _lambda_.21
= control target key start
LH: loop header
LB: loop body
LE: loop exit
PB: predicated region body
PF: predicated region fallthrough
CT: control target
= control target key end

     0   :  { %s350_s0 = inlined_call_operand.vmem [shape: f32[16,128], index: 0, kind: input, shape index: {}]   ;;  %s351_s1 = inlined_call_operand.vmem [shape: f32[1,128], index: 1, kind: input, shape index: {}]   ;;  %s352_s2 = inlined_call_operand.vmem [shape: f32[1,128], index: 2, kind: input, shape index: {}]   ;;  %s353_s3 = inlined_call_operand.vmem [shape: bf16[128,128], index: 3, kind: input, shape index: {}]   ;;  %s354_s4 = inlined_call_operand.hbm [shape: f32[16,128], index: 4, kind: output, shape index: {}]  }
   0x1   :  { %v23_v0 = vld [vmem:[%s350_s0] sm:$0xff]  ;;  %v24_v1 = vld [vmem:[%s350_s0 + $0x8] sm:$0xff] }
   0x2   :  { %25 = vadd.xlane.f32.xlu0 %v23_v0 }
   0x6   :  { %27 = vadd.xlane.f32.xlu0 %v24_v1 }
   0x7   :  { %9 = vsyncpa [#allocation4], 0  ;;  %v236_v2 = vld [vmem:[%s353_s3] sm:$0xff]   ;;  %v272_v3 = vmov 0.0   ;;  %v237_v12 = vld [vmem:[%s353_s3 + $0x8] sm:$0xff]   ;;  %vm273_vm0 = vmmov 0  }
   0x8   :  { %211 = vmatprep.subr.bf16.mxu0 %v272_v3  ;;  %v238_v13 = vld [vmem:[%s353_s3 + $0x10] sm:$0xff]   ;;  %v239_v14 = vld [vmem:[%s353_s3 + $0x18] sm:$0xff]   ;;  %v240_v15 = vld [vmem:[%s353_s3 + $0x20] sm:$0xff]   ;;  %227 = vmatprep.mubr.msk.bf16.mxu0 %vm273_vm0, %v272_v3  ;;  %s274_s11 = smov [#allocation3]  }
   0x9   :  { %212 = vmatpush3.bf16.msra.mxu0 %v236_v2  ;;  %v241_v16 = vld [vmem:[%s353_s3 + $0x28] sm:$0xff]   ;;  %v242_v17 = vld [vmem:[%s353_s3 + $0x30] sm:$0xff]   ;;  %v243_v18 = vld [vmem:[%s353_s3 + $0x38] sm:$0xff]   ;;  %s181_s12 = sshll.u32 %s274_s11, 4  ;;  %s182_s12 = int_to_ptr.vmem [resolvable:$true] %s181_s12 }
   0xa   :  { %213 = vmatprep.subr.bf16.mxu0 %v272_v3  ;;  %v192_v27 = vld [vmem:[%s351_s1] ss:$0 sm:$0xff]  ;;  %s248_s1 = scalar_lea.vmem %s182_s12, 256  ;;  %p253_p1 = scmp.lt.s32.totalorder %s182_s12, %s182_s12 }
   0xb   :  { %v193_v31 = vld [vmem:[%s352_s2] ss:$0 sm:$0xff]  ;;  %p249_p0 = scmp.ne.s32.totalorder %s182_s12, %s248_s1  ;;  %p254_p2 = scmp.lt.s32.totalorder %s248_s1, %s248_s1 }
   0xd   :  { %214 = vmatpush3.bf16.msra.mxu0 %v237_v12  ;;  %p255_p3 = por %p254_p2, %p253_p1 }
   0xe   :  { %215 = vmatprep.subr.bf16.mxu0 %v272_v3 }
   0xf   :  { %p256_p4 = pnand %p255_p3, %p249_p0 }
  0x11   :  { %216 = vmatpush3.bf16.msra.mxu0 %v238_v13 }
  0x12   :  { %217 = vmatprep.subr.bf16.mxu0 %v272_v3 }
  0x15   :  { %218 = vmatpush3.bf16.msra.mxu0 %v239_v14 }
  0x16   :  { %219 = vmatprep.subr.bf16.mxu0 %v272_v3 }
  0x19   :  { %220 = vmatpush3.bf16.msra.mxu0 %v240_v15 }
  0x1a   :  { %221 = vmatprep.subr.bf16.mxu0 %v272_v3 }
  0x1d   :  { %222 = vmatpush3.bf16.msra.mxu0 %v241_v16 }
  0x1e   :  { %223 = vmatprep.subr.bf16.mxu0 %v272_v3 }
  0x21   :  { %224 = vmatpush3.bf16.msra.mxu0 %v242_v17 }
  0x22   :  { %225 = vmatprep.subr.bf16.mxu0 %v272_v3 }
  0x25   :  { %226 = vmatpush3.bf16.msra.mxu0 %v243_v18 }
  0x8f   :  { %v26_v4 = vpop.xlane.xlu0 %25 }
  0x90   :  { %v30_v5 = vmul.f32 0.0078125, %v26_v4 }
  0x92   :  { %v32_v6 = vsub.f32 %v23_v0, %v30_v5 }
  0x93   :  { %v28_v7 = vpop.xlane.xlu0 %27 }
  0x94   :  { %v31_v8 = vmul.f32 0.0078125, %v28_v7  ;;  %v34_v9 = vmul.f32 %v32_v6, %v32_v6 }
  0x96   :  { %v33_v10 = vsub.f32 %v24_v1, %v31_v8  ;;  %36 = vadd.xlane.f32.xlu1 %v34_v9 }
  0x98   :  { %v35_v11 = vmul.f32 %v33_v10, %v33_v10 }
  0x9a   :  { %38 = vadd.xlane.f32.xlu1 %v35_v11 }
 0x123   :  { %v37_v19 = vpop.xlane.xlu1 %36 }
 0x124   :  { %v40_v20 = vmul.f32 0.0078125, %v37_v19 }
 0x126   :  { %v42_v21 = vadd.f32 1e-05, %v40_v20 }
 0x127   :  { %v39_v22 = vpop.xlane.xlu1 %38 }
 0x128   :  { %244 = vrsqrt.f32 %v42_v21  ;;  %v41_v23 = vmul.f32 0.0078125, %v39_v22 }
 0x12a   :  { %v43_v24 = vadd.f32 1e-05, %v41_v23 }
 0x12c   :  { %246 = vrsqrt.f32 %v43_v24 }
 0x132   :  { %v245_v25 = vpop.eup %244 }
 0x133   :  { %v46_v26 = vmul.f32 %v245_v25, %v32_v6 }
 0x135   :  { %v55_v30 = vmul.f32 %v192_v27, %v46_v26 }
 0x136   :  { %v247_v28 = vpop.eup %246 }
 0x137   :  { %v47_v29 = vmul.f32 %v247_v28, %v33_v10  ;;  %v64_v33 = vadd.f32 %v193_v31, %v55_v30 }
 0x139   :  { %v56_v32 = vmul.f32 %v192_v27, %v47_v29 }
 0x13b   :  { %v65_v34 = vadd.f32 %v193_v31, %v56_v32 }
 0x13d   :  { %v66_v35 = vpack.c.bf16 %v65_v34, %v64_v33 }
 0x13f   :  { %228 = vmatmul.mubr.bf16.vlgmr.msra.gmra.mrb[0].mxu0 %v66_v35 }
 0x212   :  { %v167_v36 = vpop.f32.mrb[0].mxu0 }
 0x213   :  { %174 = vst [vmem:[#allocation3] sm:$0xff] %v167_v36  ;;  %v229_v37 = vpop.f32.mrb[1].mxu0 }
 0x214   :  { %v170_v38 = vpop.f32.mrb[2].mxu0 }
 0x215   :  { %175 = vst [vmem:[#allocation3 + $0x8] sm:$0xff] %v170_v38  ;;  %v230_v39 = vpop.f32.mrb[3].mxu0 }
 0x216   :  { %259 = shalt.err (!%p256_p4)
}
 0x217   :  { %s260_s14 = scalar_lea.hbm %s354_s4, 256 }
 0x218   :  { %p261_p5 = scmp.ne.s32.totalorder %s354_s4, %s260_s14  ;;  %p264_p6 = scmp.lt.u32.totalorder %s260_s14, %s354_s4 }
 0x21a   :  { %p266_p7 = pnand %p264_p6, %p261_p5 }
 0x21c   :  { %269 = shalt.err (!%p266_p7)
}
 0x21d   :  { %s275_s19 = smov 128   ;;  %s276_s20 = smov 8  }
 0x21e   :  { %187 = dma.vmem_to_hbm [thread:$0]  %s182_s12, 256, %s354_s4, [#allocation4], %s275_s19, %s275_s19, %s276_s20  }
 0x21f   :  { %270 = dma.done.wait [#allocation4], 256  }
 0x220   :  { %271 = vsyncadd [#allocation4], 4294967040 }
 0x221   :  { %191 = vsyncpa [#allocation4], 1 }

// kernel: _lambda_.15
= control target key start
LH: loop header
LB: loop body
LE: loop exit
PB: predicated region body
PF: predicated region fallthrough
CT: control target
= control target key end

     0   :  { %s683_s1 = inlined_call_operand.vmem [shape: bf16[512,128], index: 1, kind: input, shape index: {}]   ;;  %s684_s0 = inlined_call_operand.vmem [shape: bf16[16,512], index: 0, kind: input, shape index: {}]   ;;  %s685_s2 = inlined_call_operand.vmem [shape: f32[1,128], index: 2, kind: input, shape index: {}]   ;;  %s686_s3 = inlined_call_operand.vmem [shape: f32[16,128], index: 3, kind: input, shape index: {}]   ;;  %s687_s4 = inlined_call_operand.vmem [shape: f32[16,128], index: 4, kind: output, shape index: {}]  }
   0x1   :  { %v497_v0 = vld [vmem:[%s683_s1 + $0x40] sm:$0xff]   ;;  %v501_v4 = vld [vmem:[%s683_s1 + $0x48] sm:$0xff]   ;;  %v505_v8 = vld [vmem:[%s683_s1 + $0x50] sm:$0xff]  }
   0x2   :  { %v498_v1 = vld [vmem:[%s683_s1 + $0xc0] sm:$0xff]   ;;  %453 = vmatprep.subr.bf16.mxu0 %v497_v0  ;;  %v502_v5 = vld [vmem:[%s683_s1 + $0xc8] sm:$0xff]   ;;  %v506_v9 = vld [vmem:[%s683_s1 + $0xd0] sm:$0xff]  }
   0x3   :  { %v499_v2 = vld [vmem:[%s683_s1] sm:$0xff]   ;;  %475 = vmatprep.subr.bf16.mxu1 %v498_v1  ;;  %v503_v6 = vld [vmem:[%s683_s1 + $0x8] sm:$0xff]   ;;  %v507_v10 = vld [vmem:[%s683_s1 + $0x10] sm:$0xff]  }
   0x4   :  { %v500_v3 = vld [vmem:[%s683_s1 + $0x80] sm:$0xff]   ;;  %454 = vmatpush3.bf16.msra.mxu0 %v499_v2  ;;  %v504_v7 = vld [vmem:[%s683_s1 + $0x88] sm:$0xff]   ;;  %v508_v11 = vld [vmem:[%s683_s1 + $0x90] sm:$0xff]  }
   0x5   :  { %476 = vmatpush3.bf16.msra.mxu1 %v500_v3  ;;  %455 = vmatprep.subr.bf16.mxu0 %v501_v4  ;;  %v509_v12 = vld [vmem:[%s683_s1 + $0x58] sm:$0xff]   ;;  %v513_v16 = vld [vmem:[%s683_s1 + $0x60] sm:$0xff]   ;;  %v517_v20 = vld [vmem:[%s683_s1 + $0x68] sm:$0xff]  }
   0x6   :  { %477 = vmatprep.subr.bf16.mxu1 %v502_v5  ;;  %v510_v13 = vld [vmem:[%s683_s1 + $0xd8] sm:$0xff]   ;;  %v514_v17 = vld [vmem:[%s683_s1 + $0xe0] sm:$0xff]   ;;  %v518_v21 = vld [vmem:[%s683_s1 + $0xe8] sm:$0xff]  }
   0x7   :  { %v511_v14 = vld [vmem:[%s683_s1 + $0x18] sm:$0xff]   ;;  %v515_v18 = vld [vmem:[%s683_s1 + $0x20] sm:$0xff]   ;;  %v519_v22 = vld [vmem:[%s683_s1 + $0x28] sm:$0xff]  }
   0x8   :  { %456 = vmatpush3.bf16.msra.mxu0 %v503_v6  ;;  %v512_v15 = vld [vmem:[%s683_s1 + $0x98] sm:$0xff]   ;;  %v516_v19 = vld [vmem:[%s683_s1 + $0xa0] sm:$0xff]   ;;  %v520_v23 = vld [vmem:[%s683_s1 + $0xa8] sm:$0xff]  }
   0x9   :  { %478 = vmatpush3.bf16.msra.mxu1 %v504_v7  ;;  %457 = vmatprep.subr.bf16.mxu0 %v505_v8  ;;  %v521_v24 = vld [vmem:[%s683_s1 + $0x70] sm:$0xff]   ;;  %v525_v28 = vld [vmem:[%s683_s1 + $0x78] sm:$0xff]   ;;  %v452_v45 = vld [vmem:[%s685_s2] ss:$0 sm:$0xff] }
   0xa   :  { %479 = vmatprep.subr.bf16.mxu1 %v506_v9  ;;  %v522_v25 = vld [vmem:[%s683_s1 + $0xf0] sm:$0xff]   ;;  %v526_v29 = vld [vmem:[%s683_s1 + $0xf8] sm:$0xff]   ;;  %v406_v50 = vld [vmem:[%s686_s3] sm:$0xff] }
   0xb   :  { %v523_v26 = vld [vmem:[%s683_s1 + $0x30] sm:$0xff]   ;;  %v527_v30 = vld [vmem:[%s683_s1 + $0x38] sm:$0xff]   ;;  %v407_v53 = vld [vmem:[%s686_s3 + $0x8] sm:$0xff] }
   0xc   :  { %458 = vmatpush3.bf16.msra.mxu0 %v507_v10  ;;  %v524_v27 = vld [vmem:[%s683_s1 + $0xb0] sm:$0xff]   ;;  %v528_v31 = vld [vmem:[%s683_s1 + $0xb8] sm:$0xff]  }
   0xd   :  { %480 = vmatpush3.bf16.msra.mxu1 %v508_v11  ;;  %459 = vmatprep.subr.bf16.mxu0 %v509_v12  ;;  %v529_v32 = vld [vmem:[%s684_s0] ss:$16 sps:$4 sm:$0xff]   ;;  %v531_v33 = vld [vmem:[%s684_s0 + $0x4] ss:$16 sps:$4 sm:$0xff]   ;;  %v532_v34 = vld [vmem:[%s684_s0 + $0x8] ss:$16 sps:$4 sm:$0xff]  }
   0xe   :  { %481 = vmatprep.subr.bf16.mxu1 %v510_v13  ;;  %v534_v35 = vld [vmem:[%s684_s0 + $0xc] ss:$16 sps:$4 sm:$0xff]   ;;  %338 = vmatprep.mubr.bf16.mxu0 %v531_v33 }
   0xf   :  { %379 = vmatprep.mubr.bf16.mxu1 %v534_v35 }
  0x10   :  { %460 = vmatpush3.bf16.msra.mxu0 %v511_v14 }
  0x11   :  { %482 = vmatpush3.bf16.msra.mxu1 %v512_v15  ;;  %461 = vmatprep.subr.bf16.mxu0 %v513_v16 }
  0x12   :  { %483 = vmatprep.subr.bf16.mxu1 %v514_v17 }
  0x14   :  { %462 = vmatpush3.bf16.msra.mxu0 %v515_v18 }
  0x15   :  { %484 = vmatpush3.bf16.msra.mxu1 %v516_v19  ;;  %463 = vmatprep.subr.bf16.mxu0 %v517_v20 }
  0x16   :  { %485 = vmatprep.subr.bf16.mxu1 %v518_v21 }
  0x18   :  { %464 = vmatpush3.bf16.msra.mxu0 %v519_v22 }
  0x19   :  { %486 = vmatpush3.bf16.msra.mxu1 %v520_v23  ;;  %465 = vmatprep.subr.bf16.mxu0 %v521_v24 }
  0x1a   :  { %487 = vmatprep.subr.bf16.mxu1 %v522_v25 }
  0x1c   :  { %466 = vmatpush3.bf16.msra.mxu0 %v523_v26 }
  0x1d   :  { %488 = vmatpush3.bf16.msra.mxu1 %v524_v27  ;;  %467 = vmatprep.subr.bf16.mxu0 %v525_v28 }
  0x1e   :  { %489 = vmatprep.subr.bf16.mxu1 %v526_v29 }
  0x20   :  { %468 = vmatpush3.bf16.msra.mxu0 %v527_v30 }
  0x21   :  { %490 = vmatpush3.bf16.msra.mxu1 %v528_v31 }
  0x23   :  { %339 = vmatmul.mubr.bf16.vlgmr.msra.gmra.mrb[0].mxu0 %v529_v32 }
  0x24   :  { %380 = vmatmul.mubr.bf16.vlgmr.msra.gmra.mrb[0].mxu1 %v532_v34 }
  0xf6   :  { %v469_v36 = vpop.f32.mrb[0].mxu0 }
  0xf7   :  { %v491_v37 = vpop.f32.mrb[0].mxu1  ;;  %v470_v38 = vpop.f32.mrb[1].mxu0 }
  0xf8   :  { %v471_v39 = vadd.f32 %v470_v38, %v469_v36  ;;  %v492_v40 = vpop.f32.mrb[1].mxu1  ;;  %v472_v41 = vpop.f32.mrb[2].mxu0 }
  0xf9   :  { %v493_v42 = vadd.f32 %v492_v40, %v491_v37  ;;  %v494_v43 = vpop.f32.mrb[2].mxu1  ;;  %v473_v44 = vpop.f32.mrb[3].mxu0 }
  0xfa   :  { %v474_v46 = vadd.f32 %v473_v44, %v472_v41  ;;  %v495_v47 = vpop.f32.mrb[3].mxu1 }
  0xfb   :  { %v382_v48 = vadd.f32 %v493_v42, %v471_v39  ;;  %v496_v49 = vadd.f32 %v495_v47, %v494_v43 }
  0xfd   :  { %v404_v51 = vadd.f32 %v452_v45, %v382_v48  ;;  %v385_v52 = vadd.f32 %v496_v49, %v474_v46 }
  0xff   :  { %v408_v54 = vadd.f32 %v406_v50, %v404_v51  ;;  %v405_v55 = vadd.f32 %v452_v45, %v385_v52 }
 0x101   :  { %410 = vst [vmem:[%s687_s4] sm:$0xff] %v408_v54  ;;  %v409_v56 = vadd.f32 %v407_v53, %v405_v55 }
 0x103   :  { %411 = vst [vmem:[%s687_s4 + $0x8] sm:$0xff] %v409_v56 }

</bundles_post_ra>
